<compile_context>
chip_gen: v7x
topology: tpu7x:2x2x1
jax: 0.10.0
libtpu: 0.0.40
codegen_flags: <defaults>
</compile_context>

<pallas_src>
import functools

import jax
import jax.numpy as jnp
from jax.experimental import pallas as pl
from jax.experimental.pallas import tpu as pltpu

SELU_ALPHA = 1.6732632423543772
SELU_SCALE = 1.0507009873554805
BN_EPS = 1e-5


def _tap_masks(B, H, W):
    """0/1 validity masks per conv tap offset (dh, dw) for the flattened
    (b,h,w)-on-lanes layout.  Float-only index math (no s32 vector div)."""
    HW = H * W
    L = B * HW
    idx = jax.lax.broadcasted_iota(jnp.int32, (1, L), 1).astype(jnp.float32)
    # position within each image, then row / col (robust float floor-div)
    q = idx - jnp.floor((idx + 0.5) / HW) * HW
    h = jnp.floor((q + 0.5) / W)
    w = q - h * W

    def hmask(dh):
        if dh < 0:
            return (h >= 1).astype(jnp.float32)
        if dh > 0:
            return (h <= H - 2).astype(jnp.float32)
        return None

    def wmask(dw):
        if dw < 0:
            return (w >= 1).astype(jnp.float32)
        if dw > 0:
            return (w <= W - 2).astype(jnp.float32)
        return None

    masks = {}
    for dh in (-1, 0, 1):
        for dw in (-1, 0, 1):
            mh, mw = hmask(dh), wmask(dw)
            if mh is None and mw is None:
                masks[(dh, dw)] = None
            elif mh is None:
                masks[(dh, dw)] = mw
            elif mw is None:
                masks[(dh, dw)] = mh
            else:
                masks[(dh, dw)] = mh * mw
    return masks


def _conv3x3(xc, w_taps, masks, W, L, mxu_bf16):
    """3x3 / stride-1 / pad-1 conv in channels-on-rows layout.

    xc:     (Cin, L)  activation, L = B*H*W flattened on lanes
    w_taps: (9, Cout, Cin)  per-tap weights, tap = kh*3 + kw
    Returns (Cout, L) f32 pre-BN accumulator.
    """
    # TODO(synk): at C<=4 a pure VPU broadcast-FMA would also work; this MXU
    # form is kept because it is the same code path as the realistic C>=64
    # regime and the elementwise stages (now lane-dense) dominate at demo size.
    Cin = xc.shape[0]
    Cout = w_taps.shape[1]
    P = W + 1                                   # max |shift| = W + 1
    pad = jnp.zeros((Cin, P), jnp.float32)
    xp = jnp.concatenate([pad, xc, pad], axis=1)            # (Cin, L + 2P)
    acc = jnp.zeros((Cout, L), jnp.float32)
    for kh in range(3):
        for kw in range(3):
            dh, dw = kh - 1, kw - 1
            s = dh * W + dw
            opnd = xp[:, P + s:P + s + L]                   # shifted view (Cin, L)
            m = masks[(dh, dw)]
            if m is not None:
                opnd = opnd * m
            wtap = w_taps[kh * 3 + kw]                      # (Cout, Cin)
            if mxu_bf16:
                opnd = opnd.astype(jnp.bfloat16)
                wtap = wtap.astype(jnp.bfloat16)
            acc = acc + jnp.dot(wtap, opnd, preferred_element_type=jnp.float32)
    return acc


def _bn_selu(acc, gamma, beta):
    """Training-mode BatchNorm (full-batch stats, biased var, two-pass) + SELU.

    acc: (C, L); gamma/beta: (C, 1).
    """
    L = acc.shape[1]
    inv_n = 1.0 / L
    mean = jnp.sum(acc, axis=1, keepdims=True) * inv_n
    cent = acc - mean
    var = jnp.sum(cent * cent, axis=1, keepdims=True) * inv_n     # biased
    y = cent * (gamma * jax.lax.rsqrt(var + BN_EPS)) + beta
    neg = SELU_ALPHA * (jnp.exp(jnp.minimum(y, 0.0)) - 1.0)
    return SELU_SCALE * jnp.where(y > 0, y, neg)


def _bottleneck_kernel(add_res, B, H, W, Cin, Ch, Cout, mxu_bf16,
                       x_ref, w1_ref, w2_ref, bn_ref, out_ref):
    """Fused conv1->BN->SELU -> conv2->BN->SELU (+ optional residual)."""
    HW = H * W
    L = B * HW
    x2d = x_ref[...].astype(jnp.float32)                    # (B*Cin, HW) lane-dense

    # NCHW (free-reshaped) -> channels-on-rows, (b,h,w)-on-lanes: (Cin, B*HW).
    # Only row slices + a lane concat: no transpose, no HBM round trip.
    xc = jnp.concatenate([x2d[b * Cin:(b + 1) * Cin, :] for b in range(B)],
                         axis=1)

    masks = _tap_masks(B, H, W)
    w1 = w1_ref[...].astype(jnp.float32)                    # (9, Ch, Cin)
    w2 = w2_ref[...].astype(jnp.float32)                    # (9, Cout, Ch)
    bn = bn_ref[...].astype(jnp.float32)                    # (Cmax, 4)

    # ---- Conv block 1 (hidden activation never leaves VMEM/vregs) ----
    acc1 = _conv3x3(xc, w1, masks, W, L, mxu_bf16)
    h = _bn_selu(acc1, bn[:Ch, 0:1], bn[:Ch, 1:2])          # (Ch, L)

    # ---- Conv block 2 (same layout, no reshuffle needed) ----
    acc2 = _conv3x3(h, w2, masks, W, L, mxu_bf16)
    y = _bn_selu(acc2, bn[:Cout, 2:3], bn[:Cout, 3:4])      # (Cout, L)

    if add_res:
        y = y + xc                                          # Cin == Cout here

    # Back to NCHW-flat (B*Cout, HW): aligned lane slices + row concat.
    out = jnp.concatenate([y[:, b * HW:(b + 1) * HW] for b in range(B)], axis=0)
    out_ref[...] = out.astype(out_ref.dtype)


def bottleneck_forward(x_nchw, params, shortcut=True, mxu_bf16=False):
    """Bottleneck.forward: x + conv2(conv1(x)) if add else conv2(conv1(x))."""
    B, Cin, H, W = x_nchw.shape
    Ch = params["w1"].shape[-1]
    Cout = params["w2"].shape[-1]
    add = bool(shortcut and (Cin == Cout))
    HW = H * W

    # Free reshape (NCHW is already contiguous as (B*C, H*W)); no transpose op.
    x2d = x_nchw.reshape(B * Cin, HW)

    # Per-tap (Cout, Cin) weights; tap index = kh*3 + kw.  (Tiny constants.)
    w1 = jnp.transpose(params["w1"], (0, 1, 3, 2)).reshape(9, Ch, Cin)
    w2 = jnp.transpose(params["w2"], (0, 1, 3, 2)).reshape(9, Cout, Ch)

    # Pack both BN layers' gamma/beta into ONE tiny input (one DMA, not four).
    cmax = max(Ch, Cout)
    bn = jnp.zeros((cmax, 4), jnp.float32)
    bn = bn.at[:Ch, 0].set(params["g1"]).at[:Ch, 1].set(params["b1"])
    bn = bn.at[:Cout, 2].set(params["g2"]).at[:Cout, 3].set(params["b2"])

    kernel = functools.partial(_bottleneck_kernel, add, B, H, W, Cin, Ch, Cout,
                               mxu_bf16)

    # TODO(synk): for realistic sizes (C >= 64, large H*W) this single-block
    # call should become a spatially tiled grid (pipelined BlockSpecs, two-pass
    # full-batch BN with sum/sumsq scratch + pl.when init/finalize, batch axis
    # marked "parallel" for v7x megacore, per-generation VMEM-budgeted tiles).
    # At the shapes implied by this module everything fits in a few KiB of
    # VMEM, so one fused invocation minimizes launch overhead and HBM traffic.
    out2d = pl.pallas_call(
        kernel,
        out_shape=jax.ShapeDtypeStruct((B * Cout, HW), x_nchw.dtype),
        grid=(1,),  # whole batch in one step so BN sees exact full-batch stats
        in_specs=[
            pl.BlockSpec((B * Cin, HW), lambda i: (0, 0)),
            pl.BlockSpec((9, Ch, Cin), lambda i: (0, 0, 0)),
            pl.BlockSpec((9, Cout, Ch), lambda i: (0, 0, 0)),
            pl.BlockSpec((cmax, 4), lambda i: (0, 0)),
        ],
        out_specs=pl.BlockSpec((B * Cout, HW), lambda i: (0, 0)),
        compiler_params=pltpu.CompilerParams(
            dimension_semantics=("arbitrary",),
            vmem_limit_bytes=32 * 1024 * 1024),
    )(x2d, w1, w2, bn)

    return out2d.reshape(B, Cout, H, W)                     # free reshape


def init_bottleneck_params(key, in_channels, out_channels, expansion=0.5):
    hidden = int(out_channels * expansion)
    k1, k2, k3, k4, k5, k6 = jax.random.split(key, 6)
    return {
        # conv weights in HWIO
        "w1": 0.2 * jax.random.normal(k1, (3, 3, in_channels, hidden), jnp.float32),
        "g1": 1.0 + 0.1 * jax.random.normal(k2, (hidden,), jnp.float32),
        "b1": 0.1 * jax.random.normal(k3, (hidden,), jnp.float32),
        "w2": 0.2 * jax.random.normal(k4, (3, 3, hidden, out_channels), jnp.float32),
        "g2": 1.0 + 0.1 * jax.random.normal(k5, (out_channels,), jnp.float32),
        "b2": 0.1 * jax.random.normal(k6, (out_channels,), jnp.float32),
    }


# ---------------- pure-JAX reference (for correctness check) ----------------
def _ref_block(x, w, g, b, residual=None):
    y = jax.lax.conv_general_dilated(
        x, w, window_strides=(1, 1), padding="SAME",
        dimension_numbers=("NHWC", "HWIO", "NHWC"))
    mean = y.mean(axis=(0, 1, 2))
    var = ((y - mean) ** 2).mean(axis=(0, 1, 2))
    y = (y - mean) / jnp.sqrt(var + BN_EPS) * g + b
    y = jax.nn.selu(y)
    if residual is not None:
        y = y + residual
    return y


def _ref_bottleneck(x_nchw, params, shortcut=True):
    in_c = x_nchw.shape[1]
    out_c = params["w2"].shape[-1]
    add = shortcut and (in_c == out_c)
    x = jnp.transpose(x_nchw, (0, 2, 3, 1))
    h = _ref_block(x, params["w1"], params["g1"], params["b1"])
    y = _ref_block(h, params["w2"], params["g2"], params["b2"],
                   residual=x if add else None)
    return jnp.transpose(y, (0, 3, 1, 2))


if __name__ == "__main__":
    key = jax.random.PRNGKey(0)
    kx, kp = jax.random.split(key)

    B, C, Hs, Ws = 2, 4, 16, 16          # in_channels = out_channels = 4 -> residual add
    x = jax.random.normal(kx, (B, C, Hs, Ws), jnp.float32)
    params = init_bottleneck_params(kp, in_channels=C, out_channels=C, expansion=0.5)

    out = jax.block_until_ready(bottleneck_forward(x, params, shortcut=True))
    ref = jax.block_until_ready(_ref_bottleneck(x, params, shortcut=True))

    assert out.shape == (B, C, Hs, Ws)
    err = float(jnp.max(jnp.abs(out - ref)))
    assert jnp.allclose(out, ref, atol=1e-4, rtol=1e-4), f"max err {err}"

    print("KERNEL_OK")
</pallas_src>

<mosaic_0001>
module attributes {stable_mosaic.version = 11 : i64} {
  func.func @_bottleneck_kernel(%arg0: i32, %arg1: memref<8x256xf32, #tpu.memory_space<vmem>>, %arg2: memref<9x2x4xf32, #tpu.memory_space<vmem>>, %arg3: memref<9x4x2xf32, #tpu.memory_space<vmem>>, %arg4: memref<4x4xf32, #tpu.memory_space<vmem>>, %arg5: memref<8x256xf32, #tpu.memory_space<vmem>>) attributes {dimension_semantics = [#tpu.dimension_semantics<arbitrary>], iteration_bounds = array<i64: 1>, scalar_prefetch = 0 : i64, scratch_operands = 0 : i64, tpu.core_type = #tpu.core_type<tc>, window_params = [{pipeline_mode = #tpu.pipeline_mode<synchronous>, transform_indices = @transform_0, window_bounds = array<i64: 8, 256>}, {pipeline_mode = #tpu.pipeline_mode<synchronous>, transform_indices = @transform_1, window_bounds = array<i64: 9, 2, 4>}, {pipeline_mode = #tpu.pipeline_mode<synchronous>, transform_indices = @transform_2, window_bounds = array<i64: 9, 4, 2>}, {pipeline_mode = #tpu.pipeline_mode<synchronous>, transform_indices = @transform_3, window_bounds = array<i64: 4, 4>}, {pipeline_mode = #tpu.pipeline_mode<synchronous>, transform_indices = @transform_4, window_bounds = array<i64: 8, 256>}]} {
    %c0 = arith.constant 0 : index
    %c0_0 = arith.constant 0 : index
    %0 = vector.load %arg1[%c0, %c0_0] : memref<8x256xf32, #tpu.memory_space<vmem>>, vector<8x256xf32>
    %1 = vector.extract_strided_slice %0 {offsets = [0, 0], sizes = [4, 256], strides = [1, 1]} : vector<8x256xf32> to vector<4x256xf32>
    %2 = vector.extract_strided_slice %0 {offsets = [4, 0], sizes = [4, 256], strides = [1, 1]} : vector<8x256xf32> to vector<4x256xf32>
    %3 = tpu.concatenate %1, %2 in 1 : vector<4x256xf32>, vector<4x256xf32> -> vector<4x512xf32>
    %4 = tpu.iota {dimensions = array<i32: 1>} : vector<1x512xi32>
    %5 = arith.sitofp %4 : vector<1x512xi32> to vector<1x512xf32>
    %cst = arith.constant 5.000000e-01 : f32
    %6 = vector.broadcast %cst : f32 to vector<1x512xf32>
    %7 = arith.addf %5, %6 : vector<1x512xf32>
    %cst_1 = arith.constant 2.560000e+02 : f32
    %8 = vector.broadcast %cst_1 : f32 to vector<1x512xf32>
    %9 = arith.divf %7, %8 : vector<1x512xf32>
    %10 = math.floor %9 : vector<1x512xf32>
    %cst_2 = arith.constant 2.560000e+02 : f32
    %11 = vector.broadcast %cst_2 : f32 to vector<1x512xf32>
    %12 = arith.mulf %10, %11 : vector<1x512xf32>
    %13 = arith.subf %5, %12 : vector<1x512xf32>
    %cst_3 = arith.constant 5.000000e-01 : f32
    %14 = vector.broadcast %cst_3 : f32 to vector<1x512xf32>
    %15 = arith.addf %13, %14 : vector<1x512xf32>
    %cst_4 = arith.constant 1.600000e+01 : f32
    %16 = vector.broadcast %cst_4 : f32 to vector<1x512xf32>
    %17 = arith.divf %15, %16 : vector<1x512xf32>
    %18 = math.floor %17 : vector<1x512xf32>
    %cst_5 = arith.constant 1.600000e+01 : f32
    %19 = vector.broadcast %cst_5 : f32 to vector<1x512xf32>
    %20 = arith.mulf %18, %19 : vector<1x512xf32>
    %21 = arith.subf %13, %20 : vector<1x512xf32>
    %cst_6 = arith.constant 1.000000e+00 : f32
    %22 = vector.broadcast %cst_6 : f32 to vector<1x512xf32>
    %23 = arith.cmpf oge, %18, %22 : vector<1x512xf32>
    %24 = arith.extui %23 : vector<1x512xi1> to vector<1x512xi32>
    %25 = arith.sitofp %24 : vector<1x512xi32> to vector<1x512xf32>
    %cst_7 = arith.constant 1.000000e+00 : f32
    %26 = vector.broadcast %cst_7 : f32 to vector<1x512xf32>
    %27 = arith.cmpf oge, %21, %26 : vector<1x512xf32>
    %28 = arith.extui %27 : vector<1x512xi1> to vector<1x512xi32>
    %29 = arith.sitofp %28 : vector<1x512xi32> to vector<1x512xf32>
    %30 = arith.mulf %25, %29 : vector<1x512xf32>
    %cst_8 = arith.constant 1.000000e+00 : f32
    %31 = vector.broadcast %cst_8 : f32 to vector<1x512xf32>
    %32 = arith.cmpf oge, %18, %31 : vector<1x512xf32>
    %33 = arith.extui %32 : vector<1x512xi1> to vector<1x512xi32>
    %34 = arith.sitofp %33 : vector<1x512xi32> to vector<1x512xf32>
    %cst_9 = arith.constant 1.000000e+00 : f32
    %35 = vector.broadcast %cst_9 : f32 to vector<1x512xf32>
    %36 = arith.cmpf oge, %18, %35 : vector<1x512xf32>
    %37 = arith.extui %36 : vector<1x512xi1> to vector<1x512xi32>
    %38 = arith.sitofp %37 : vector<1x512xi32> to vector<1x512xf32>
    %cst_10 = arith.constant 1.400000e+01 : f32
    %39 = vector.broadcast %cst_10 : f32 to vector<1x512xf32>
    %40 = arith.cmpf ole, %21, %39 : vector<1x512xf32>
    %41 = arith.extui %40 : vector<1x512xi1> to vector<1x512xi32>
    %42 = arith.sitofp %41 : vector<1x512xi32> to vector<1x512xf32>
    %43 = arith.mulf %38, %42 : vector<1x512xf32>
    %cst_11 = arith.constant 1.000000e+00 : f32
    %44 = vector.broadcast %cst_11 : f32 to vector<1x512xf32>
    %45 = arith.cmpf oge, %21, %44 : vector<1x512xf32>
    %46 = arith.extui %45 : vector<1x512xi1> to vector<1x512xi32>
    %47 = arith.sitofp %46 : vector<1x512xi32> to vector<1x512xf32>
    %cst_12 = arith.constant 1.400000e+01 : f32
    %48 = vector.broadcast %cst_12 : f32 to vector<1x512xf32>
    %49 = arith.cmpf ole, %21, %48 : vector<1x512xf32>
    %50 = arith.extui %49 : vector<1x512xi1> to vector<1x512xi32>
    %51 = arith.sitofp %50 : vector<1x512xi32> to vector<1x512xf32>
    %cst_13 = arith.constant 1.400000e+01 : f32
    %52 = vector.broadcast %cst_13 : f32 to vector<1x512xf32>
    %53 = arith.cmpf ole, %18, %52 : vector<1x512xf32>
    %54 = arith.extui %53 : vector<1x512xi1> to vector<1x512xi32>
    %55 = arith.sitofp %54 : vector<1x512xi32> to vector<1x512xf32>
    %cst_14 = arith.constant 1.000000e+00 : f32
    %56 = vector.broadcast %cst_14 : f32 to vector<1x512xf32>
    %57 = arith.cmpf oge, %21, %56 : vector<1x512xf32>
    %58 = arith.extui %57 : vector<1x512xi1> to vector<1x512xi32>
    %59 = arith.sitofp %58 : vector<1x512xi32> to vector<1x512xf32>
    %60 = arith.mulf %55, %59 : vector<1x512xf32>
    %cst_15 = arith.constant 1.400000e+01 : f32
    %61 = vector.broadcast %cst_15 : f32 to vector<1x512xf32>
    %62 = arith.cmpf ole, %18, %61 : vector<1x512xf32>
    %63 = arith.extui %62 : vector<1x512xi1> to vector<1x512xi32>
    %64 = arith.sitofp %63 : vector<1x512xi32> to vector<1x512xf32>
    %cst_16 = arith.constant 1.400000e+01 : f32
    %65 = vector.broadcast %cst_16 : f32 to vector<1x512xf32>
    %66 = arith.cmpf ole, %18, %65 : vector<1x512xf32>
    %67 = arith.extui %66 : vector<1x512xi1> to vector<1x512xi32>
    %68 = arith.sitofp %67 : vector<1x512xi32> to vector<1x512xf32>
    %cst_17 = arith.constant 1.400000e+01 : f32
    %69 = vector.broadcast %cst_17 : f32 to vector<1x512xf32>
    %70 = arith.cmpf ole, %21, %69 : vector<1x512xf32>
    %71 = arith.extui %70 : vector<1x512xi1> to vector<1x512xi32>
    %72 = arith.sitofp %71 : vector<1x512xi32> to vector<1x512xf32>
    %73 = arith.mulf %68, %72 : vector<1x512xf32>
    %c0_18 = arith.constant 0 : index
    %c0_19 = arith.constant 0 : index
    %c0_20 = arith.constant 0 : index
    %74 = vector.load %arg2[%c0_18, %c0_19, %c0_20] : memref<9x2x4xf32, #tpu.memory_space<vmem>>, vector<9x2x4xf32>
    %c0_21 = arith.constant 0 : index
    %c0_22 = arith.constant 0 : index
    %c0_23 = arith.constant 0 : index
    %75 = vector.load %arg3[%c0_21, %c0_22, %c0_23] : memref<9x4x2xf32, #tpu.memory_space<vmem>>, vector<9x4x2xf32>
    %c0_24 = arith.constant 0 : index
    %c0_25 = arith.constant 0 : index
    %76 = vector.load %arg4[%c0_24, %c0_25] : memref<4x4xf32, #tpu.memory_space<vmem>>, vector<4x4xf32>
    %cst_26 = arith.constant 0.000000e+00 : f32
    %77 = vector.broadcast %cst_26 : f32 to vector<4x17xf32>
    %78 = tpu.concatenate %77, %3, %77 in 1 : vector<4x17xf32>, vector<4x512xf32>, vector<4x17xf32> -> vector<4x546xf32>
    %cst_27 = arith.constant 0.000000e+00 : f32
    %79 = vector.broadcast %cst_27 : f32 to vector<2x512xf32>
    %80 = vector.extract_strided_slice %78 {offsets = [0, 0], sizes = [4, 512], strides = [1, 1]} : vector<4x546xf32> to vector<4x512xf32>
    %81 = vector.broadcast %30 : vector<1x512xf32> to vector<4x512xf32>
    %82 = arith.mulf %80, %81 : vector<4x512xf32>
    %83 = vector.extract_strided_slice %74 {offsets = [0, 0, 0], sizes = [1, 2, 4], strides = [1, 1, 1]} : vector<9x2x4xf32> to vector<1x2x4xf32>
    %84 = vector.shape_cast %83 : vector<1x2x4xf32> to vector<2x4xf32>
    %cst_28 = arith.constant dense<0.000000e+00> : vector<2x512xf32>
    %85 = tpu.matmul %84, %82, %cst_28 {dimension_numbers = #tpu.dot_dimension_numbers<[1], [0], [0], [1], [0, 0, 1, 1], [], []>} : vector<2x4xf32>, vector<4x512xf32>, vector<2x512xf32> -> vector<2x512xf32>
    %86 = arith.addf %79, %85 : vector<2x512xf32>
    %87 = vector.extract_strided_slice %78 {offsets = [0, 1], sizes = [4, 512], strides = [1, 1]} : vector<4x546xf32> to vector<4x512xf32>
    %88 = vector.broadcast %34 : vector<1x512xf32> to vector<4x512xf32>
    %89 = arith.mulf %87, %88 : vector<4x512xf32>
    %90 = vector.extract_strided_slice %74 {offsets = [1, 0, 0], sizes = [1, 2, 4], strides = [1, 1, 1]} : vector<9x2x4xf32> to vector<1x2x4xf32>
    %91 = vector.shape_cast %90 : vector<1x2x4xf32> to vector<2x4xf32>
    %cst_29 = arith.constant dense<0.000000e+00> : vector<2x512xf32>
    %92 = tpu.matmul %91, %89, %cst_29 {dimension_numbers = #tpu.dot_dimension_numbers<[1], [0], [0], [1], [0, 0, 1, 1], [], []>} : vector<2x4xf32>, vector<4x512xf32>, vector<2x512xf32> -> vector<2x512xf32>
    %93 = arith.addf %86, %92 : vector<2x512xf32>
    %94 = vector.extract_strided_slice %78 {offsets = [0, 2], sizes = [4, 512], strides = [1, 1]} : vector<4x546xf32> to vector<4x512xf32>
    %95 = vector.broadcast %43 : vector<1x512xf32> to vector<4x512xf32>
    %96 = arith.mulf %94, %95 : vector<4x512xf32>
    %97 = vector.extract_strided_slice %74 {offsets = [2, 0, 0], sizes = [1, 2, 4], strides = [1, 1, 1]} : vector<9x2x4xf32> to vector<1x2x4xf32>
    %98 = vector.shape_cast %97 : vector<1x2x4xf32> to vector<2x4xf32>
    %cst_30 = arith.constant dense<0.000000e+00> : vector<2x512xf32>
    %99 = tpu.matmul %98, %96, %cst_30 {dimension_numbers = #tpu.dot_dimension_numbers<[1], [0], [0], [1], [0, 0, 1, 1], [], []>} : vector<2x4xf32>, vector<4x512xf32>, vector<2x512xf32> -> vector<2x512xf32>
    %100 = arith.addf %93, %99 : vector<2x512xf32>
    %101 = vector.extract_strided_slice %78 {offsets = [0, 16], sizes = [4, 512], strides = [1, 1]} : vector<4x546xf32> to vector<4x512xf32>
    %102 = vector.broadcast %47 : vector<1x512xf32> to vector<4x512xf32>
    %103 = arith.mulf %101, %102 : vector<4x512xf32>
    %104 = vector.extract_strided_slice %74 {offsets = [3, 0, 0], sizes = [1, 2, 4], strides = [1, 1, 1]} : vector<9x2x4xf32> to vector<1x2x4xf32>
    %105 = vector.shape_cast %104 : vector<1x2x4xf32> to vector<2x4xf32>
    %cst_31 = arith.constant dense<0.000000e+00> : vector<2x512xf32>
    %106 = tpu.matmul %105, %103, %cst_31 {dimension_numbers = #tpu.dot_dimension_numbers<[1], [0], [0], [1], [0, 0, 1, 1], [], []>} : vector<2x4xf32>, vector<4x512xf32>, vector<2x512xf32> -> vector<2x512xf32>
    %107 = arith.addf %100, %106 : vector<2x512xf32>
    %108 = vector.extract_strided_slice %78 {offsets = [0, 17], sizes = [4, 512], strides = [1, 1]} : vector<4x546xf32> to vector<4x512xf32>
    %109 = vector.extract_strided_slice %74 {offsets = [4, 0, 0], sizes = [1, 2, 4], strides = [1, 1, 1]} : vector<9x2x4xf32> to vector<1x2x4xf32>
    %110 = vector.shape_cast %109 : vector<1x2x4xf32> to vector<2x4xf32>
    %cst_32 = arith.constant dense<0.000000e+00> : vector<2x512xf32>
    %111 = tpu.matmul %110, %108, %cst_32 {dimension_numbers = #tpu.dot_dimension_numbers<[1], [0], [0], [1], [0, 0, 1, 1], [], []>} : vector<2x4xf32>, vector<4x512xf32>, vector<2x512xf32> -> vector<2x512xf32>
    %112 = arith.addf %107, %111 : vector<2x512xf32>
    %113 = vector.extract_strided_slice %78 {offsets = [0, 18], sizes = [4, 512], strides = [1, 1]} : vector<4x546xf32> to vector<4x512xf32>
    %114 = vector.broadcast %51 : vector<1x512xf32> to vector<4x512xf32>
    %115 = arith.mulf %113, %114 : vector<4x512xf32>
    %116 = vector.extract_strided_slice %74 {offsets = [5, 0, 0], sizes = [1, 2, 4], strides = [1, 1, 1]} : vector<9x2x4xf32> to vector<1x2x4xf32>
    %117 = vector.shape_cast %116 : vector<1x2x4xf32> to vector<2x4xf32>
    %cst_33 = arith.constant dense<0.000000e+00> : vector<2x512xf32>
    %118 = tpu.matmul %117, %115, %cst_33 {dimension_numbers = #tpu.dot_dimension_numbers<[1], [0], [0], [1], [0, 0, 1, 1], [], []>} : vector<2x4xf32>, vector<4x512xf32>, vector<2x512xf32> -> vector<2x512xf32>
    %119 = arith.addf %112, %118 : vector<2x512xf32>
    %120 = vector.extract_strided_slice %78 {offsets = [0, 32], sizes = [4, 512], strides = [1, 1]} : vector<4x546xf32> to vector<4x512xf32>
    %121 = vector.broadcast %60 : vector<1x512xf32> to vector<4x512xf32>
    %122 = arith.mulf %120, %121 : vector<4x512xf32>
    %123 = vector.extract_strided_slice %74 {offsets = [6, 0, 0], sizes = [1, 2, 4], strides = [1, 1, 1]} : vector<9x2x4xf32> to vector<1x2x4xf32>
    %124 = vector.shape_cast %123 : vector<1x2x4xf32> to vector<2x4xf32>
    %cst_34 = arith.constant dense<0.000000e+00> : vector<2x512xf32>
    %125 = tpu.matmul %124, %122, %cst_34 {dimension_numbers = #tpu.dot_dimension_numbers<[1], [0], [0], [1], [0, 0, 1, 1], [], []>} : vector<2x4xf32>, vector<4x512xf32>, vector<2x512xf32> -> vector<2x512xf32>
    %126 = arith.addf %119, %125 : vector<2x512xf32>
    %127 = vector.extract_strided_slice %78 {offsets = [0, 33], sizes = [4, 512], strides = [1, 1]} : vector<4x546xf32> to vector<4x512xf32>
    %128 = vector.broadcast %64 : vector<1x512xf32> to vector<4x512xf32>
    %129 = arith.mulf %127, %128 : vector<4x512xf32>
    %130 = vector.extract_strided_slice %74 {offsets = [7, 0, 0], sizes = [1, 2, 4], strides = [1, 1, 1]} : vector<9x2x4xf32> to vector<1x2x4xf32>
    %131 = vector.shape_cast %130 : vector<1x2x4xf32> to vector<2x4xf32>
    %cst_35 = arith.constant dense<0.000000e+00> : vector<2x512xf32>
    %132 = tpu.matmul %131, %129, %cst_35 {dimension_numbers = #tpu.dot_dimension_numbers<[1], [0], [0], [1], [0, 0, 1, 1], [], []>} : vector<2x4xf32>, vector<4x512xf32>, vector<2x512xf32> -> vector<2x512xf32>
    %133 = arith.addf %126, %132 : vector<2x512xf32>
    %134 = vector.extract_strided_slice %78 {offsets = [0, 34], sizes = [4, 512], strides = [1, 1]} : vector<4x546xf32> to vector<4x512xf32>
    %135 = vector.broadcast %73 : vector<1x512xf32> to vector<4x512xf32>
    %136 = arith.mulf %134, %135 : vector<4x512xf32>
    %137 = vector.extract_strided_slice %74 {offsets = [8, 0, 0], sizes = [1, 2, 4], strides = [1, 1, 1]} : vector<9x2x4xf32> to vector<1x2x4xf32>
    %138 = vector.shape_cast %137 : vector<1x2x4xf32> to vector<2x4xf32>
    %cst_36 = arith.constant dense<0.000000e+00> : vector<2x512xf32>
    %139 = tpu.matmul %138, %136, %cst_36 {dimension_numbers = #tpu.dot_dimension_numbers<[1], [0], [0], [1], [0, 0, 1, 1], [], []>} : vector<2x4xf32>, vector<4x512xf32>, vector<2x512xf32> -> vector<2x512xf32>
    %140 = arith.addf %133, %139 : vector<2x512xf32>
    %141 = vector.extract_strided_slice %76 {offsets = [0, 0], sizes = [2, 1], strides = [1, 1]} : vector<4x4xf32> to vector<2x1xf32>
    %142 = vector.extract_strided_slice %76 {offsets = [0, 1], sizes = [2, 1], strides = [1, 1]} : vector<4x4xf32> to vector<2x1xf32>
    %cst_37 = arith.constant dense<0.000000e+00> : vector<2xf32>
    %143 = vector.multi_reduction <add>, %140, %cst_37 [1] : vector<2x512xf32> to vector<2xf32>
    %144 = vector.shape_cast %143 : vector<2xf32> to vector<2x1xf32>
    %cst_38 = arith.constant 0.001953125 : f32
    %145 = vector.broadcast %cst_38 : f32 to vector<2x1xf32>
    %146 = arith.mulf %144, %145 : vector<2x1xf32>
    %147 = vector.broadcast %146 : vector<2x1xf32> to vector<2x512xf32>
    %148 = arith.subf %140, %147 : vector<2x512xf32>
    %149 = arith.mulf %148, %148 : vector<2x512xf32>
    %cst_39 = arith.constant dense<0.000000e+00> : vector<2xf32>
    %150 = vector.multi_reduction <add>, %149, %cst_39 [1] : vector<2x512xf32> to vector<2xf32>
    %151 = vector.shape_cast %150 : vector<2xf32> to vector<2x1xf32>
    %cst_40 = arith.constant 0.001953125 : f32
    %152 = vector.broadcast %cst_40 : f32 to vector<2x1xf32>
    %153 = arith.mulf %151, %152 : vector<2x1xf32>
    %cst_41 = arith.constant 9.99999974E-6 : f32
    %154 = vector.broadcast %cst_41 : f32 to vector<2x1xf32>
    %155 = arith.addf %153, %154 : vector<2x1xf32>
    %156 = math.rsqrt %155 : vector<2x1xf32>
    %157 = arith.mulf %141, %156 : vector<2x1xf32>
    %158 = vector.broadcast %157 : vector<2x1xf32> to vector<2x512xf32>
    %159 = arith.mulf %148, %158 : vector<2x512xf32>
    %160 = vector.broadcast %142 : vector<2x1xf32> to vector<2x512xf32>
    %161 = arith.addf %159, %160 : vector<2x512xf32>
    %cst_42 = arith.constant 0.000000e+00 : f32
    %162 = vector.broadcast %cst_42 : f32 to vector<2x512xf32>
    %163 = arith.minimumf %161, %162 : vector<2x512xf32>
    %164 = math.exp %163 : vector<2x512xf32>
    %cst_43 = arith.constant 1.000000e+00 : f32
    %165 = vector.broadcast %cst_43 : f32 to vector<2x512xf32>
    %166 = arith.subf %164, %165 : vector<2x512xf32>
    %cst_44 = arith.constant 1.67326319 : f32
    %167 = vector.broadcast %cst_44 : f32 to vector<2x512xf32>
    %168 = arith.mulf %167, %166 : vector<2x512xf32>
    %cst_45 = arith.constant 0.000000e+00 : f32
    %169 = vector.broadcast %cst_45 : f32 to vector<2x512xf32>
    %170 = arith.cmpf ogt, %161, %169 : vector<2x512xf32>
    %171 = arith.select %170, %161, %168 : vector<2x512xi1>, vector<2x512xf32>
    %cst_46 = arith.constant 1.05070102 : f32
    %172 = vector.broadcast %cst_46 : f32 to vector<2x512xf32>
    %173 = arith.mulf %172, %171 : vector<2x512xf32>
    %cst_47 = arith.constant 0.000000e+00 : f32
    %174 = vector.broadcast %cst_47 : f32 to vector<2x17xf32>
    %175 = tpu.concatenate %174, %173, %174 in 1 : vector<2x17xf32>, vector<2x512xf32>, vector<2x17xf32> -> vector<2x546xf32>
    %cst_48 = arith.constant 0.000000e+00 : f32
    %176 = vector.broadcast %cst_48 : f32 to vector<4x512xf32>
    %177 = vector.extract_strided_slice %175 {offsets = [0, 0], sizes = [2, 512], strides = [1, 1]} : vector<2x546xf32> to vector<2x512xf32>
    %178 = vector.broadcast %30 : vector<1x512xf32> to vector<2x512xf32>
    %179 = arith.mulf %177, %178 : vector<2x512xf32>
    %180 = vector.extract_strided_slice %75 {offsets = [0, 0, 0], sizes = [1, 4, 2], strides = [1, 1, 1]} : vector<9x4x2xf32> to vector<1x4x2xf32>
    %181 = vector.shape_cast %180 : vector<1x4x2xf32> to vector<4x2xf32>
    %cst_49 = arith.constant dense<0.000000e+00> : vector<4x512xf32>
    %182 = tpu.matmul %181, %179, %cst_49 {dimension_numbers = #tpu.dot_dimension_numbers<[1], [0], [0], [1], [0, 0, 1, 1], [], []>} : vector<4x2xf32>, vector<2x512xf32>, vector<4x512xf32> -> vector<4x512xf32>
    %183 = arith.addf %176, %182 : vector<4x512xf32>
    %184 = vector.extract_strided_slice %175 {offsets = [0, 1], sizes = [2, 512], strides = [1, 1]} : vector<2x546xf32> to vector<2x512xf32>
    %185 = vector.broadcast %34 : vector<1x512xf32> to vector<2x512xf32>
    %186 = arith.mulf %184, %185 : vector<2x512xf32>
    %187 = vector.extract_strided_slice %75 {offsets = [1, 0, 0], sizes = [1, 4, 2], strides = [1, 1, 1]} : vector<9x4x2xf32> to vector<1x4x2xf32>
    %188 = vector.shape_cast %187 : vector<1x4x2xf32> to vector<4x2xf32>
    %cst_50 = arith.constant dense<0.000000e+00> : vector<4x512xf32>
    %189 = tpu.matmul %188, %186, %cst_50 {dimension_numbers = #tpu.dot_dimension_numbers<[1], [0], [0], [1], [0, 0, 1, 1], [], []>} : vector<4x2xf32>, vector<2x512xf32>, vector<4x512xf32> -> vector<4x512xf32>
    %190 = arith.addf %183, %189 : vector<4x512xf32>
    %191 = vector.extract_strided_slice %175 {offsets = [0, 2], sizes = [2, 512], strides = [1, 1]} : vector<2x546xf32> to vector<2x512xf32>
    %192 = vector.broadcast %43 : vector<1x512xf32> to vector<2x512xf32>
    %193 = arith.mulf %191, %192 : vector<2x512xf32>
    %194 = vector.extract_strided_slice %75 {offsets = [2, 0, 0], sizes = [1, 4, 2], strides = [1, 1, 1]} : vector<9x4x2xf32> to vector<1x4x2xf32>
    %195 = vector.shape_cast %194 : vector<1x4x2xf32> to vector<4x2xf32>
    %cst_51 = arith.constant dense<0.000000e+00> : vector<4x512xf32>
    %196 = tpu.matmul %195, %193, %cst_51 {dimension_numbers = #tpu.dot_dimension_numbers<[1], [0], [0], [1], [0, 0, 1, 1], [], []>} : vector<4x2xf32>, vector<2x512xf32>, vector<4x512xf32> -> vector<4x512xf32>
    %197 = arith.addf %190, %196 : vector<4x512xf32>
    %198 = vector.extract_strided_slice %175 {offsets = [0, 16], sizes = [2, 512], strides = [1, 1]} : vector<2x546xf32> to vector<2x512xf32>
    %199 = vector.broadcast %47 : vector<1x512xf32> to vector<2x512xf32>
    %200 = arith.mulf %198, %199 : vector<2x512xf32>
    %201 = vector.extract_strided_slice %75 {offsets = [3, 0, 0], sizes = [1, 4, 2], strides = [1, 1, 1]} : vector<9x4x2xf32> to vector<1x4x2xf32>
    %202 = vector.shape_cast %201 : vector<1x4x2xf32> to vector<4x2xf32>
    %cst_52 = arith.constant dense<0.000000e+00> : vector<4x512xf32>
    %203 = tpu.matmul %202, %200, %cst_52 {dimension_numbers = #tpu.dot_dimension_numbers<[1], [0], [0], [1], [0, 0, 1, 1], [], []>} : vector<4x2xf32>, vector<2x512xf32>, vector<4x512xf32> -> vector<4x512xf32>
    %204 = arith.addf %197, %203 : vector<4x512xf32>
    %205 = vector.extract_strided_slice %175 {offsets = [0, 17], sizes = [2, 512], strides = [1, 1]} : vector<2x546xf32> to vector<2x512xf32>
    %206 = vector.extract_strided_slice %75 {offsets = [4, 0, 0], sizes = [1, 4, 2], strides = [1, 1, 1]} : vector<9x4x2xf32> to vector<1x4x2xf32>
    %207 = vector.shape_cast %206 : vector<1x4x2xf32> to vector<4x2xf32>
    %cst_53 = arith.constant dense<0.000000e+00> : vector<4x512xf32>
    %208 = tpu.matmul %207, %205, %cst_53 {dimension_numbers = #tpu.dot_dimension_numbers<[1], [0], [0], [1], [0, 0, 1, 1], [], []>} : vector<4x2xf32>, vector<2x512xf32>, vector<4x512xf32> -> vector<4x512xf32>
    %209 = arith.addf %204, %208 : vector<4x512xf32>
    %210 = vector.extract_strided_slice %175 {offsets = [0, 18], sizes = [2, 512], strides = [1, 1]} : vector<2x546xf32> to vector<2x512xf32>
    %211 = vector.broadcast %51 : vector<1x512xf32> to vector<2x512xf32>
    %212 = arith.mulf %210, %211 : vector<2x512xf32>
    %213 = vector.extract_strided_slice %75 {offsets = [5, 0, 0], sizes = [1, 4, 2], strides = [1, 1, 1]} : vector<9x4x2xf32> to vector<1x4x2xf32>
    %214 = vector.shape_cast %213 : vector<1x4x2xf32> to vector<4x2xf32>
    %cst_54 = arith.constant dense<0.000000e+00> : vector<4x512xf32>
    %215 = tpu.matmul %214, %212, %cst_54 {dimension_numbers = #tpu.dot_dimension_numbers<[1], [0], [0], [1], [0, 0, 1, 1], [], []>} : vector<4x2xf32>, vector<2x512xf32>, vector<4x512xf32> -> vector<4x512xf32>
    %216 = arith.addf %209, %215 : vector<4x512xf32>
    %217 = vector.extract_strided_slice %175 {offsets = [0, 32], sizes = [2, 512], strides = [1, 1]} : vector<2x546xf32> to vector<2x512xf32>
    %218 = vector.broadcast %60 : vector<1x512xf32> to vector<2x512xf32>
    %219 = arith.mulf %217, %218 : vector<2x512xf32>
    %220 = vector.extract_strided_slice %75 {offsets = [6, 0, 0], sizes = [1, 4, 2], strides = [1, 1, 1]} : vector<9x4x2xf32> to vector<1x4x2xf32>
    %221 = vector.shape_cast %220 : vector<1x4x2xf32> to vector<4x2xf32>
    %cst_55 = arith.constant dense<0.000000e+00> : vector<4x512xf32>
    %222 = tpu.matmul %221, %219, %cst_55 {dimension_numbers = #tpu.dot_dimension_numbers<[1], [0], [0], [1], [0, 0, 1, 1], [], []>} : vector<4x2xf32>, vector<2x512xf32>, vector<4x512xf32> -> vector<4x512xf32>
    %223 = arith.addf %216, %222 : vector<4x512xf32>
    %224 = vector.extract_strided_slice %175 {offsets = [0, 33], sizes = [2, 512], strides = [1, 1]} : vector<2x546xf32> to vector<2x512xf32>
    %225 = vector.broadcast %64 : vector<1x512xf32> to vector<2x512xf32>
    %226 = arith.mulf %224, %225 : vector<2x512xf32>
    %227 = vector.extract_strided_slice %75 {offsets = [7, 0, 0], sizes = [1, 4, 2], strides = [1, 1, 1]} : vector<9x4x2xf32> to vector<1x4x2xf32>
    %228 = vector.shape_cast %227 : vector<1x4x2xf32> to vector<4x2xf32>
    %cst_56 = arith.constant dense<0.000000e+00> : vector<4x512xf32>
    %229 = tpu.matmul %228, %226, %cst_56 {dimension_numbers = #tpu.dot_dimension_numbers<[1], [0], [0], [1], [0, 0, 1, 1], [], []>} : vector<4x2xf32>, vector<2x512xf32>, vector<4x512xf32> -> vector<4x512xf32>
    %230 = arith.addf %223, %229 : vector<4x512xf32>
    %231 = vector.extract_strided_slice %175 {offsets = [0, 34], sizes = [2, 512], strides = [1, 1]} : vector<2x546xf32> to vector<2x512xf32>
    %232 = vector.broadcast %73 : vector<1x512xf32> to vector<2x512xf32>
    %233 = arith.mulf %231, %232 : vector<2x512xf32>
    %234 = vector.extract_strided_slice %75 {offsets = [8, 0, 0], sizes = [1, 4, 2], strides = [1, 1, 1]} : vector<9x4x2xf32> to vector<1x4x2xf32>
    %235 = vector.shape_cast %234 : vector<1x4x2xf32> to vector<4x2xf32>
    %cst_57 = arith.constant dense<0.000000e+00> : vector<4x512xf32>
    %236 = tpu.matmul %235, %233, %cst_57 {dimension_numbers = #tpu.dot_dimension_numbers<[1], [0], [0], [1], [0, 0, 1, 1], [], []>} : vector<4x2xf32>, vector<2x512xf32>, vector<4x512xf32> -> vector<4x512xf32>
    %237 = arith.addf %230, %236 : vector<4x512xf32>
    %238 = vector.extract_strided_slice %76 {offsets = [0, 2], sizes = [4, 1], strides = [1, 1]} : vector<4x4xf32> to vector<4x1xf32>
    %239 = vector.extract_strided_slice %76 {offsets = [0, 3], sizes = [4, 1], strides = [1, 1]} : vector<4x4xf32> to vector<4x1xf32>
    %cst_58 = arith.constant dense<0.000000e+00> : vector<4xf32>
    %240 = vector.multi_reduction <add>, %237, %cst_58 [1] : vector<4x512xf32> to vector<4xf32>
    %241 = vector.shape_cast %240 : vector<4xf32> to vector<4x1xf32>
    %cst_59 = arith.constant 0.001953125 : f32
    %242 = vector.broadcast %cst_59 : f32 to vector<4x1xf32>
    %243 = arith.mulf %241, %242 : vector<4x1xf32>
    %244 = vector.broadcast %243 : vector<4x1xf32> to vector<4x512xf32>
    %245 = arith.subf %237, %244 : vector<4x512xf32>
    %246 = arith.mulf %245, %245 : vector<4x512xf32>
    %cst_60 = arith.constant dense<0.000000e+00> : vector<4xf32>
    %247 = vector.multi_reduction <add>, %246, %cst_60 [1] : vector<4x512xf32> to vector<4xf32>
    %248 = vector.shape_cast %247 : vector<4xf32> to vector<4x1xf32>
    %cst_61 = arith.constant 0.001953125 : f32
    %249 = vector.broadcast %cst_61 : f32 to vector<4x1xf32>
    %250 = arith.mulf %248, %249 : vector<4x1xf32>
    %cst_62 = arith.constant 9.99999974E-6 : f32
    %251 = vector.broadcast %cst_62 : f32 to vector<4x1xf32>
    %252 = arith.addf %250, %251 : vector<4x1xf32>
    %253 = math.rsqrt %252 : vector<4x1xf32>
    %254 = arith.mulf %238, %253 : vector<4x1xf32>
    %255 = vector.broadcast %254 : vector<4x1xf32> to vector<4x512xf32>
    %256 = arith.mulf %245, %255 : vector<4x512xf32>
    %257 = vector.broadcast %239 : vector<4x1xf32> to vector<4x512xf32>
    %258 = arith.addf %256, %257 : vector<4x512xf32>
    %cst_63 = arith.constant 0.000000e+00 : f32
    %259 = vector.broadcast %cst_63 : f32 to vector<4x512xf32>
    %260 = arith.minimumf %258, %259 : vector<4x512xf32>
    %261 = math.exp %260 : vector<4x512xf32>
    %cst_64 = arith.constant 1.000000e+00 : f32
    %262 = vector.broadcast %cst_64 : f32 to vector<4x512xf32>
    %263 = arith.subf %261, %262 : vector<4x512xf32>
    %cst_65 = arith.constant 1.67326319 : f32
    %264 = vector.broadcast %cst_65 : f32 to vector<4x512xf32>
    %265 = arith.mulf %264, %263 : vector<4x512xf32>
    %cst_66 = arith.constant 0.000000e+00 : f32
    %266 = vector.broadcast %cst_66 : f32 to vector<4x512xf32>
    %267 = arith.cmpf ogt, %258, %266 : vector<4x512xf32>
    %268 = arith.select %267, %258, %265 : vector<4x512xi1>, vector<4x512xf32>
    %cst_67 = arith.constant 1.05070102 : f32
    %269 = vector.broadcast %cst_67 : f32 to vector<4x512xf32>
    %270 = arith.mulf %269, %268 : vector<4x512xf32>
    %271 = arith.addf %270, %3 : vector<4x512xf32>
    %272 = vector.extract_strided_slice %271 {offsets = [0, 0], sizes = [4, 256], strides = [1, 1]} : vector<4x512xf32> to vector<4x256xf32>
    %273 = vector.extract_strided_slice %271 {offsets = [0, 256], sizes = [4, 256], strides = [1, 1]} : vector<4x512xf32> to vector<4x256xf32>
    %274 = tpu.concatenate %272, %273 in 0 : vector<4x256xf32>, vector<4x256xf32> -> vector<8x256xf32>
    %c0_68 = arith.constant 0 : index
    %c0_69 = arith.constant 0 : index
    %275 = vector.load %arg5[%c0_68, %c0_69] : memref<8x256xf32, #tpu.memory_space<vmem>>, vector<8x256xf32>
    tpu.vector_store %arg5[%c0_68, %c0_69], %274 {strides = array<i32>} : memref<8x256xf32, #tpu.memory_space<vmem>>, vector<8x256xf32>,
    return
  }
  func.func @transform_0(%arg0: i32) -> (i32, i32) {
    %c0_i32 = arith.constant 0 : i32
    %c0_i32_0 = arith.constant 0 : i32
    %c0_i32_1 = arith.constant 0 : i32
    return %c0_i32, %c0_i32_0 : i32, i32
  }
  func.func @transform_1(%arg0: i32) -> (i32, i32, i32) {
    %c0_i32 = arith.constant 0 : i32
    %c0_i32_0 = arith.constant 0 : i32
    %c0_i32_1 = arith.constant 0 : i32
    %c0_i32_2 = arith.constant 0 : i32
    return %c0_i32, %c0_i32_0, %c0_i32_1 : i32, i32, i32
  }
  func.func @transform_2(%arg0: i32) -> (i32, i32, i32) {
    %c0_i32 = arith.constant 0 : i32
    %c0_i32_0 = arith.constant 0 : i32
    %c0_i32_1 = arith.constant 0 : i32
    %c0_i32_2 = arith.constant 0 : i32
    return %c0_i32, %c0_i32_0, %c0_i32_1 : i32, i32, i32
  }
  func.func @transform_3(%arg0: i32) -> (i32, i32) {
    %c0_i32 = arith.constant 0 : i32
    %c0_i32_0 = arith.constant 0 : i32
    %c0_i32_1 = arith.constant 0 : i32
    return %c0_i32, %c0_i32_0 : i32, i32
  }
  func.func @transform_4(%arg0: i32) -> (i32, i32) {
    %c0_i32 = arith.constant 0 : i32
    %c0_i32_0 = arith.constant 0 : i32
    %c0_i32_1 = arith.constant 0 : i32
    return %c0_i32, %c0_i32_0 : i32, i32
  }
}

</mosaic_0001>

<bundles_post_ra>
// kernel: tpu_custom_call.1
= control target key start
LH: loop header
LB: loop body
LE: loop exit
PB: predicated region body
PF: predicated region fallthrough
CT: control target
= control target key end

     0   :  { %v26_v1 = vlaneseq  ;;  %s4051_s17 = smov 17   ;;  %v4883_v3 = vmov 0.0   ;;  %s4876_s0 = inlined_call_operand.vmem [shape: f32[8,256], index: 0, kind: input, shape index: {}]   ;;  %s4877_s1 = inlined_call_operand.vmem [shape: f32[9,2,4], index: 1, kind: input, shape index: {}]   ;;  %s4878_s2 = inlined_call_operand.vmem [shape: f32[9,4,2], index: 2, kind: input, shape index: {}]   ;;  %s4879_s3 = inlined_call_operand.vmem [shape: f32[4,4], index: 3, kind: input, shape index: {}]   ;;  %s4880_s4 = inlined_call_operand.hbm [shape: f32[8,256], index: 4, kind: output, shape index: {}]  }
   0x1   :  { %v4101_v0 = vld [vmem:[%s4876_s0] sm:$0xff]  ;;  %377 = vmatprep.mubr.f32.mxu1 %v4883_v3 }
   0x2   :  { %160 = vrot.lane.b32.xlu0 %v4101_v0, %s4051_s17  ;;  %v4882_v2 = vrot.slane %v4101_v0, 4 }
   0x3   :  { %9 = vsyncpa [#allocation3], 0  ;;  %v4110_v4 = vld [vmem:[%s4876_s0 + $0x8] sm:$0xff]  ;;  %v27_v5 = vand.u32 127, %v26_v1  ;;  %306 = vmatprep.mubr.f32.mxu0 %v4883_v3  ;;  %s4053_s20 = smov 1   ;;  %s4054_s21 = smov 2  }
   0x4   :  { %4886 = vst [vmem:[#allocation5_spill] sm:$0xff] %v4110_v4  ;;  %164 = vrot.lane.b32.xlu1 %v4882_v2, %s4051_s17  ;;  %v4881_v56 = vrot.slane %v4110_v4, 4  ;;  %s4055_s22 = smov 16   ;;  %s4056_s23 = smov 18  }
   0x5   :  { %v29_v6 = vadd.s32 256, %v27_v5  ;;  %v30_v7 = vadd.s32 384, %v27_v5  ;;  %v28_v8 = vadd.s32 128, %v27_v5  ;;  %v31_v9 = vcvt.s32.f32 %v27_v5  ;;  %s4057_s24 = smov 32   ;;  %s4058_s25 = smov 33  }
   0x6   :  { %162 = vrot.lane.b32.xlu0 %v4110_v4, %s4051_s17  ;;  %s4059_s26 = smov 34   ;;  %s4060_s27 = smov 127  }
   0x7   :  { %v33_v10 = vcvt.s32.f32 %v29_v6  ;;  %v34_v11 = vcvt.s32.f32 %v30_v7  ;;  %v32_v12 = vcvt.s32.f32 %v28_v8  ;;  %v35_v13 = vadd.f32 0.5, %v31_v9  ;;  %s4061_s28 = smov 126   ;;  %s4062_s29 = smov 112  }
   0x8   :  { %s4063_s30 = smov 111   ;;  %s4064_s5 = smov 110  }
   0x9   :  { %v37_v14 = vadd.f32 0.5, %v33_v10  ;;  %v38_v15 = vadd.f32 0.5, %v34_v11  ;;  %v36_v16 = vadd.f32 0.5, %v32_v12  ;;  %v40_v17 = vmul.f32 0.00390625, %v35_v13  ;;  %s4065_s6 = smov 95   ;;  %s4066_s7 = smov 96  }
   0xa   :  { %s4067_s8 = smov 94  }
   0xb   :  { %v42_v18 = vmul.f32 0.00390625, %v37_v14  ;;  %v43_v19 = vmul.f32 0.00390625, %v38_v15  ;;  %v41_v20 = vmul.f32 0.00390625, %v36_v16  ;;  %v44_v21 = vfloor.f32 %v40_v17 }
   0xd   :  { %v46_v22 = vfloor.f32 %v42_v18  ;;  %v47_v23 = vfloor.f32 %v43_v19  ;;  %v45_v24 = vfloor.f32 %v41_v20  ;;  %v48_v25 = vmul.f32 256.0, %v44_v21 }
   0xf   :  { %v50_v26 = vmul.f32 256.0, %v46_v22  ;;  %v51_v27 = vmul.f32 256.0, %v47_v23  ;;  %v49_v28 = vmul.f32 256.0, %v45_v24  ;;  %v52_v29 = vsub.f32 %v31_v9, %v48_v25 }
  0x11   :  { %v54_v30 = vsub.f32 %v33_v10, %v50_v26  ;;  %v55_v31 = vsub.f32 %v34_v11, %v51_v27  ;;  %v53_v32 = vsub.f32 %v32_v12, %v49_v28  ;;  %v56_v33 = vadd.f32 0.5, %v52_v29 }
  0x13   :  { %v58_v34 = vadd.f32 0.5, %v54_v30  ;;  %v59_v35 = vadd.f32 0.5, %v55_v31  ;;  %v57_v36 = vadd.f32 0.5, %v53_v32  ;;  %v61_v37 = vmul.f32 0.0625, %v56_v33 }
  0x15   :  { %v63_v38 = vmul.f32 0.0625, %v58_v34  ;;  %v64_v39 = vmul.f32 0.0625, %v59_v35  ;;  %v62_v40 = vmul.f32 0.0625, %v57_v36  ;;  %v4118_v41 = vfloor.f32 %v61_v37 }
  0x17   :  { %v4120_v42 = vfloor.f32 %v63_v38  ;;  %v4122_v43 = vfloor.f32 %v64_v39  ;;  %v4124_v44 = vfloor.f32 %v62_v40  ;;  %vm77_vm0 = vcmp.ge.f32.partialorder %v4118_v41, 1.0 }
  0x18   :  { %v3742_v45 = vsel %vm77_vm0, 1.0, %v4883_v3  ;;  %v69_v46 = vmul.f32 16.0, %v4118_v41  ;;  %vm121_vm12 = vcmp.le.f32.partialorder %v4118_v41, 14.0  ;;  %vm168_vm0 = vcmask 138240  }
  0x19   :  { %vm79_vm1 = vcmp.ge.f32.partialorder %v4120_v42, 1.0  ;;  %vm80_vm2 = vcmp.ge.f32.partialorder %v4122_v43, 1.0  ;;  %vm78_vm3 = vcmp.ge.f32.partialorder %v4124_v44, 1.0  ;;  %v71_v47 = vmul.f32 16.0, %v4120_v42 }
  0x1a   :  { %v3744_v48 = vsel %vm79_vm1, 1.0, %v4883_v3  ;;  %v3745_v49 = vsel %vm80_vm2, 1.0, %v4883_v3  ;;  %v3743_v50 = vsel %vm78_vm3, 1.0, %v4883_v3  ;;  %v73_v51 = vsub.f32 %v52_v29, %v69_v46 }
  0x1b   :  { %v3965_v52 = vpack.i.bf16 %v3745_v49, %v3744_v48  ;;  %v3960_v53 = vpack.i.bf16 %v3743_v50, %v3742_v45  ;;  %v75_v54 = vsub.f32 %v54_v30, %v71_v47  ;;  %v70_v55 = vmul.f32 16.0, %v4124_v44 }
  0x1c   :  { %vm105_vm4 = vcmp.le.f32.partialorder %v73_v51, 14.0  ;;  %vm89_vm5 = vcmp.ge.f32.partialorder %v73_v51, 1.0  ;;  %v72_v57 = vmul.f32 16.0, %v4122_v43  ;;  %v3754_v19 = vsel %vm121_vm12, 1.0, %v4883_v3 }
  0x1d   :  { %3966 = vrot.lane.b32.xlu0 %v3965_v52, %s4053_s20  ;;  %3961 = vrot.lane.b32.xlu1 %v3960_v53, %s4053_s20  ;;  %v4140_v58 = vsel %vm105_vm4, 1.0, %v4883_v3  ;;  %vm107_vm6 = vcmp.le.f32.partialorder %v75_v54, 14.0  ;;  %v74_v59 = vsub.f32 %v53_v32, %v70_v55  ;;  %v3746_v60 = vsel %vm89_vm5, 1.0, %v4883_v3 }
  0x1e   :  { %v117_v61 = vmul.f32 %v4140_v58, %v3742_v45  ;;  %v4145_v62 = vsel %vm107_vm6, 1.0, %v4883_v3  ;;  %v4147_v63 = vmul.f32 %v3746_v60, %v3742_v45  ;;  %v76_v1 = vsub.f32 %v55_v31, %v72_v57 }
  0x1f   :  { %vm106_vm7 = vcmp.le.f32.partialorder %v74_v59, 14.0  ;;  %vm90_vm8 = vcmp.ge.f32.partialorder %v74_v59, 1.0  ;;  %vm91_vm9 = vcmp.ge.f32.partialorder %v75_v54, 1.0  ;;  %v119_v7 = vmul.f32 %v4145_v62, %v3744_v48 }
  0x20   :  { %v3751_v5 = vsel %vm106_vm7, 1.0, %v4883_v3  ;;  %v3747_v6 = vsel %vm90_vm8, 1.0, %v4883_v3  ;;  %vm108_vm10 = vcmp.le.f32.partialorder %v76_v1, 14.0  ;;  %vm92_vm11 = vcmp.ge.f32.partialorder %v76_v1, 1.0 }
  0x21   :  { %545 = vrot.lane.b32.xlu0 %v117_v61, %s4054_s21  ;;  %166 = vrot.lane.b32.xlu1 %v4881_v56, %s4051_s17  ;;  %v118_v8 = vmul.f32 %v3751_v5, %v3743_v50  ;;  %v4155_v9 = vmul.f32 %v3747_v6, %v3743_v50  ;;  %v3753_v10 = vsel %vm108_vm10, 1.0, %v4883_v3  ;;  %v3748_v11 = vsel %vm91_vm9, 1.0, %v4883_v3 }
  0x22   :  { %v3749_v12 = vsel %vm92_vm11, 1.0, %v4883_v3  ;;  %v4162_v14 = vmul.f32 %v3748_v11, %v3744_v48  ;;  %v3970_v15 = vpack.i.bf16 %v3747_v6, %v3746_v60  ;;  %v120_v16 = vmul.f32 %v3753_v10, %v3745_v49 }
  0x23   :  { %v4160_v13 = vmul.f32 %v3749_v12, %v3745_v49  ;;  %v3980_v17 = vpack.i.bf16 %v3751_v5, %v4140_v58  ;;  %v3975_v18 = vpack.i.bf16 %v3749_v12, %v3748_v11  ;;  %vm123_vm13 = vcmp.le.f32.partialorder %v4120_v42, 14.0 }
  0x24   :  { %vm122_vm14 = vcmp.le.f32.partialorder %v4124_v44, 14.0  ;;  %v133_v20 = vmul.f32 %v3754_v19, %v3746_v60  ;;  %v3985_v21 = vpack.i.bf16 %v3753_v10, %v4145_v62  ;;  %v3756_v22 = vsel %vm123_vm13, 1.0, %v4883_v3 }
  0x25   :  { %549 = vrot.lane.b32.xlu0 %v119_v7, %s4054_s21  ;;  %547 = vrot.lane.b32.xlu1 %v118_v8, %s4054_s21  ;;  %v3755_v23 = vsel %vm122_vm14, 1.0, %v4883_v3  ;;  %vm124_vm15 = vcmp.le.f32.partialorder %v4122_v43, 14.0  ;;  %v135_v24 = vmul.f32 %v3756_v22, %v3748_v11  ;;  %v137_v32 = vmul.f32 %v3754_v19, %v4140_v58 }
  0x26   :  { %v134_v25 = vmul.f32 %v3755_v23, %v3747_v6  ;;  %v3757_v26 = vsel %vm124_vm15, 1.0, %v4883_v3  ;;  %v3990_v27 = vpack.i.bf16 %v3755_v23, %v3754_v19  ;;  %v138_v29 = vmul.f32 %v3755_v23, %v3751_v5 }
  0x27   :  { %v136_v28 = vmul.f32 %v3757_v26, %v3749_v12  ;;  %v3995_v30 = vpack.i.bf16 %v3757_v26, %v3756_v22  ;;  %v140_v31 = vmul.f32 %v3757_v26, %v3753_v10  ;;  %v139_v33 = vmul.f32 %v3756_v22, %v4145_v62 }
  0x28   :  { %vm195_vm1 = vcmask 7168   ;;  %vm756_vm2 = vcmask 130048   ;;  %vm553_vm3 = vcmask 15360   ;;  %vm1133_vm4 = vcmask 146432  }
  0x29   :  { %3971 = vrot.lane.b32.xlu0 %v3970_v15, %s4055_s22  ;;  %551 = vrot.lane.b32.xlu1 %v120_v16, %s4054_s21  ;;  %vm1539_vm5 = vcmask 269312   ;;  %vm1336_vm6 = vcmask 261120   ;;  %vm1742_vm7 = vcmask 277504   ;;  %vm224_vm8 = vcmask 1039360  }
  0x2a   :  { %vm233_vm9 = vcmask 1043456   ;;  %vm229_vm10 = vcmask 31744   ;;  %vm582_vm11 = vcmask 1031168   ;;  %vm785_vm12 = vcmask 916480  }
  0x2b   :  { %vm959_vm13 = vcmask 908288   ;;  %vm1162_vm14 = vcmask 900096   ;;  %vm1365_vm15 = vcmask 785408  }
  0x2d   :  { %3981 = vrot.lane.b32.xlu0 %v3980_v17, %s4056_s23  ;;  %3976 = vrot.lane.b32.xlu1 %v3975_v18, %s4055_s22 }
  0x31   :  { %1328 = vrot.lane.b32.xlu0 %v133_v20, %s4057_s24  ;;  %3986 = vrot.lane.b32.xlu1 %v3985_v21, %s4056_s23 }
  0x35   :  { %1332 = vrot.lane.b32.xlu0 %v135_v24, %s4057_s24  ;;  %1330 = vrot.lane.b32.xlu1 %v134_v25, %s4057_s24 }
  0x39   :  { %3991 = vrot.lane.b32.xlu0 %v3990_v27, %s4058_s25  ;;  %1334 = vrot.lane.b32.xlu1 %v136_v28, %s4057_s24 }
  0x3d   :  { %1736 = vrot.lane.b32.xlu0 %v138_v29, %s4059_s26  ;;  %3996 = vrot.lane.b32.xlu1 %v3995_v30, %s4058_s25 }
  0x41   :  { %1740 = vrot.lane.b32.xlu0 %v140_v31, %s4059_s26  ;;  %1734 = vrot.lane.b32.xlu1 %v137_v32, %s4059_s26 }
  0x45   :  { %1738 = vrot.lane.b32.xlu1 %v139_v33, %s4059_s26 }
  0x74   :  { %v161_v34 = vpop.permute.xlu0 %160 }
  0x75   :  { %v4181_v43 = vsel %vm168_vm0, 0.0, %v161_v34 }
  0x76   :  { %v165_v36 = vpop.permute.xlu1 %164 }
  0x78   :  { %v163_v35 = vpop.permute.xlu0 %162 }
  0x79   :  { %v4184_v44 = vsel %vm168_vm0, %v163_v35, %v165_v36  ;;  %v4217_v59 = vsel %vm168_vm0, %v161_v34, %v163_v35 }
  0x8f   :  { %v3967_v37 = vpop.permute.xlu0 %3966  ;;  %v3962_v38 = vpop.permute.xlu1 %3961 }
  0x90   :  { %v4176_v39 = vunpack.i.h.bf16 %v3967_v37  ;;  %v3968_v40 = vunpack.i.l.bf16 %v3967_v37  ;;  %v3964_v41 = vunpack.i.h.bf16 %v3962_v38  ;;  %v4178_v42 = vunpack.i.l.bf16 %v3962_v38 }
  0x92   :  { %v204_v45 = vmul.f32 %v4178_v42, %v4181_v43  ;;  %v4189_v46 = vsel %vm195_vm1, %v3964_v41, %v3968_v40  ;;  %v4204_v52 = vsel %vm195_vm1, %v3968_v40, %v4176_v39  ;;  %v4213_v58 = vsel %vm195_vm1, %v4178_v42, %v3964_v41 }
  0x93   :  { %v4191_v47 = vpop.permute.xlu0 %545  ;;  %v167_v48 = vpop.permute.xlu1 %166  ;;  %v206_v49 = vmul.f32 %v4189_v46, %v4184_v44  ;;  %v205_v60 = vmul.f32 %v4213_v58, %v4217_v59  ;;  %vm1568_vm1 = vcmask 777216  }
  0x94   :  { %v4196_v50 = vsel %vm168_vm0, %v165_v36, %v167_v48  ;;  %v4199_v51 = vsel %vm168_vm0, %v167_v48, 0.0  ;;  %214 = vrot.lane.b32.xlu0 %v204_v45, %s4060_s27  ;;  %v562_v1 = vmul.f32 %v4191_v47, %v4181_v43 }
  0x95   :  { %218 = vrot.lane.b32.xlu1 %v206_v49, %s4060_s27  ;;  %v208_v53 = vmul.f32 %v4176_v39, %v4199_v51  ;;  %v207_v57 = vmul.f32 %v4204_v52, %v4196_v50 }
  0x97   :  { %v550_v54 = vpop.permute.xlu0 %549  ;;  %v548_v55 = vpop.permute.xlu1 %547 }
  0x98   :  { %222 = vrot.lane.b32.xlu0 %v208_v53, %s4060_s27  ;;  %v4252_v20 = vsel %vm553_vm3, %v548_v55, %v550_v54  ;;  %v4268_v26 = vsel %vm553_vm3, %v4191_v47, %v548_v55 }
  0x99   :  { %220 = vrot.lane.b32.xlu1 %v207_v57, %s4060_s27  ;;  %v564_v23 = vmul.f32 %v4252_v20, %v4184_v44  ;;  %v563_v28 = vmul.f32 %v4268_v26, %v4217_v59 }
  0x9b   :  { %v3972_v61 = vpop.permute.xlu0 %3971  ;;  %v4222_v62 = vpop.permute.xlu1 %551 }
  0x9c   :  { %v4226_v5 = vunpack.i.l.bf16 %v3972_v61  ;;  %216 = vrot.lane.b32.xlu0 %v205_v60, %s4060_s27  ;;  %v3974_v7 = vunpack.i.h.bf16 %v3972_v61  ;;  %v566_v24 = vmul.f32 %v4222_v62, %v4199_v51  ;;  %v4264_v25 = vsel %vm553_vm3, %v550_v54, %v4222_v62 }
  0x9d   :  { %572 = vrot.lane.b32.xlu1 %v562_v1, %s4061_s28  ;;  %v565_v27 = vmul.f32 %v4264_v25, %v4196_v50 }
  0x9e   :  { %v765_v6 = vmul.f32 %v4226_v5, %v4181_v43  ;;  %v4242_v17 = vsel %vm756_vm2, %v4226_v5, %v3974_v7 }
  0x9f   :  { %v3977_v8 = vpop.permute.xlu1 %3976  ;;  %v766_v19 = vmul.f32 %v4242_v17, %v4217_v59  ;;  %v3982_v22 = vpop.permute.xlu0 %3981 }
  0xa0   :  { %v4232_v10 = vunpack.i.h.bf16 %v3977_v8  ;;  %v3978_v11 = vunpack.i.l.bf16 %v3977_v8  ;;  %775 = vrot.lane.b32.xlu0 %v765_v6, %s4062_s29  ;;  %v3984_v30 = vunpack.i.h.bf16 %v3982_v22  ;;  %v4280_v31 = vunpack.i.l.bf16 %v3982_v22 }
  0xa2   :  { %v769_v12 = vmul.f32 %v4232_v10, %v4199_v51  ;;  %v4237_v15 = vsel %vm756_vm2, %v3974_v7, %v3978_v11  ;;  %v4246_v18 = vsel %vm756_vm2, %v3978_v11, %v4232_v10  ;;  %v4288_v34 = vsel %vm1133_vm4, %v4280_v31, %v3984_v30 }
  0xa3   :  { %v767_v16 = vmul.f32 %v4237_v15, %v4184_v44  ;;  %v768_v21 = vmul.f32 %v4246_v18, %v4196_v50  ;;  %v4276_v29 = vpop.permute.xlu0 %1328  ;;  %v3987_v32 = vpop.permute.xlu1 %3986  ;;  %v1143_v36 = vmul.f32 %v4288_v34, %v4217_v59  ;;  %v1142_v45 = vmul.f32 %v4280_v31, %v4181_v43 }
  0xa4   :  { %783 = vrot.lane.b32.xlu0 %v769_v12, %s4062_s29  ;;  %v3988_v35 = vunpack.i.l.bf16 %v3987_v32  ;;  %v4296_v37 = vunpack.i.h.bf16 %v3987_v32  ;;  %v1345_v6 = vmul.f32 %v4276_v29, %v4181_v43  ;;  %vm1771_vm2 = vcmask 769024  }
  0xa5   :  { %779 = vrot.lane.b32.xlu1 %v767_v16, %s4062_s29 }
  0xa6   :  { %v4300_v41 = vsel %vm1133_vm4, %v3984_v30, %v3988_v35  ;;  %v4313_v54 = vsel %vm1133_vm4, %v3988_v35, %v4296_v37  ;;  %v1146_v57 = vmul.f32 %v4296_v37, %v4199_v51  ;;  %vm1933_vm4 = vcmask 1041408  }
  0xa7   :  { %v1333_v33 = vpop.permute.xlu0 %1332  ;;  %v1331_v38 = vpop.permute.xlu1 %1330  ;;  %v1144_v53 = vmul.f32 %v4300_v41, %v4184_v44  ;;  %v1145_v60 = vmul.f32 %v4313_v54, %v4196_v50 }
  0xa8   :  { %777 = vrot.lane.b32.xlu0 %v766_v19, %s4062_s29  ;;  %v4332_v7 = vsel %vm1336_vm6, %v1331_v38, %v1333_v33  ;;  %v4344_v19 = vsel %vm1336_vm6, %v4276_v29, %v1331_v38 }
  0xa9   :  { %781 = vrot.lane.b32.xlu1 %v768_v21, %s4062_s29  ;;  %v1347_v11 = vmul.f32 %v4332_v7, %v4184_v44 }
  0xab   :  { %v3992_v40 = vpop.permute.xlu0 %3991  ;;  %v4316_v55 = vpop.permute.xlu1 %1334 }
  0xac   :  { %576 = vrot.lane.b32.xlu0 %v564_v23, %s4061_s28  ;;  %v3994_v48 = vunpack.i.h.bf16 %v3992_v40  ;;  %v4306_v49 = vunpack.i.l.bf16 %v3992_v40  ;;  %v1349_v12 = vmul.f32 %v4316_v55, %v4199_v51  ;;  %v4341_v16 = vsel %vm1336_vm6, %v1333_v33, %v4316_v55 }
  0xad   :  { %580 = vrot.lane.b32.xlu1 %v566_v24, %s4061_s28  ;;  %v1348_v23 = vmul.f32 %v4341_v16, %v4196_v50  ;;  %v1346_v24 = vmul.f32 %v4344_v19, %v4217_v59 }
  0xae   :  { %v4324_v61 = vsel %vm1539_vm5, %v4306_v49, %v3994_v48  ;;  %v1548_v30 = vmul.f32 %v4306_v49, %v4181_v43 }
  0xaf   :  { %v1549_v1 = vmul.f32 %v4324_v61, %v4217_v59  ;;  %v3997_v8 = vpop.permute.xlu1 %3996  ;;  %v1737_v33 = vpop.permute.xlu0 %1736 }
  0xb0   :  { %578 = vrot.lane.b32.xlu0 %v565_v27, %s4061_s28  ;;  %v3998_v21 = vunpack.i.l.bf16 %v3997_v8  ;;  %v4354_v27 = vunpack.i.h.bf16 %v3997_v8 }
  0xb1   :  { %574 = vrot.lane.b32.xlu1 %v563_v28, %s4061_s28 }
  0xb2   :  { %v4358_v28 = vsel %vm1539_vm5, %v3994_v48, %v3998_v21  ;;  %v1552_v38 = vmul.f32 %v4354_v27, %v4199_v51 }
  0xb3   :  { %v4348_v22 = vpop.permute.xlu1 %1734  ;;  %v1550_v32 = vmul.f32 %v4358_v28, %v4184_v44  ;;  %v4379_v48 = vpop.permute.xlu0 %1740 }
  0xb4   :  { %953 = vrot.lane.b32.xlu0 %v4184_v44, %s4063_s30 }
  0xb5   :  { %951 = vrot.lane.b32.xlu1 %v4217_v59, %s4063_s30 }
  0xb7   :  { %v1739_v35 = vpop.permute.xlu1 %1738 }
  0xb8   :  { %955 = vrot.lane.b32.xlu0 %v4196_v50, %s4063_s30  ;;  %v4373_v40 = vsel %vm1742_vm7, %v1737_v33, %v1739_v35 }
  0xb9   :  { %949 = vrot.lane.b32.xlu1 %v4181_v43, %s4063_s30 }
  0xbc   :  { %1154 = vrot.lane.b32.xlu0 %v1143_v36, %s4064_s5  ;;  %v4368_v36 = vsel %vm1539_vm5, %v3998_v21, %v4354_v27 }
  0xbd   :  { %957 = vrot.lane.b32.xlu1 %v4199_v51, %s4063_s30 }
  0xc0   :  { %1152 = vrot.lane.b32.xlu0 %v1142_v45, %s4064_s5  ;;  %v1551_v45 = vmul.f32 %v4368_v36, %v4196_v50 }
  0xc1   :  { %1156 = vrot.lane.b32.xlu1 %v1144_v53, %s4064_s5  ;;  %v1753_v53 = vmul.f32 %v4373_v40, %v4184_v44 }
  0xc4   :  { %1160 = vrot.lane.b32.xlu0 %v1146_v57, %s4064_s5  ;;  %v4384_v57 = vsel %vm1742_vm7, %v1739_v35, %v4379_v48 }
  0xc5   :  { %1158 = vrot.lane.b32.xlu1 %v1145_v60, %s4064_s5  ;;  %v1751_v60 = vmul.f32 %v4348_v22, %v4181_v43 }
  0xc8   :  { %1560 = vrot.lane.b32.xlu0 %v1549_v1, %s4065_s6  ;;  %v4390_v1 = vsel %vm1742_vm7, %v4348_v22, %v1737_v33  ;;  %v142_v33 = vld [vmem:[%s4877_s1 + $0x2] sm:$0x3] }
  0xc9   :  { %1355 = vrot.lane.b32.xlu1 %v1345_v6, %s4066_s7  ;;  %v1754_v6 = vmul.f32 %v4384_v57, %v4196_v50  ;;  %v1752_v8 = vmul.f32 %v4390_v1, %v4217_v59 }
  0xcc   :  { %1359 = vrot.lane.b32.xlu0 %v1347_v11, %s4066_s7  ;;  %v1755_v11 = vmul.f32 %v4379_v48, %v4199_v51  ;;  %v182_v51 = vmul.f32 %v4196_v50, %v4160_v13  ;;  %v180_v50 = vmul.f32 %v4217_v59, %v4155_v9  ;;  %v141_v59 = vld [vmem:[%s4877_s1] sm:$0x3] }
  0xcd   :  { %1363 = vrot.lane.b32.xlu1 %v1349_v12, %s4066_s7 }
  0xd0   :  { %1361 = vrot.lane.b32.xlu0 %v1348_v23, %s4066_s7 }
  0xd1   :  { %1357 = vrot.lane.b32.xlu1 %v1346_v24, %s4066_s7 }
  0xd4   :  { %1558 = vrot.lane.b32.xlu0 %v1548_v30, %s4065_s6 }
  0xd5   :  { %1562 = vrot.lane.b32.xlu1 %v1550_v32, %s4065_s6 }
  0xd8   :  { %1566 = vrot.lane.b32.xlu0 %v1552_v38, %s4065_s6  ;;  %v181_v38 = vmul.f32 %v4184_v44, %v4162_v14  ;;  %v179_v44 = vmul.f32 %v4181_v43, %v4147_v63 }
  0xd9   :  { %1564 = vrot.lane.b32.xlu1 %v1551_v45, %s4065_s6 }
  0xdc   :  { %1765 = vrot.lane.b32.xlu0 %v1753_v53, %s4067_s8 }
  0xdd   :  { %1761 = vrot.lane.b32.xlu1 %v1751_v60, %s4067_s8 }
  0xe0   :  { %1767 = vrot.lane.b32.xlu0 %v1754_v6, %s4067_s8 }
  0xe1   :  { %1763 = vrot.lane.b32.xlu1 %v1752_v8, %s4067_s8 }
  0xe5   :  { %1769 = vrot.lane.b32.xlu1 %v1755_v11, %s4067_s8 }
 0x106   :  { %v215_v12 = vpop.permute.xlu0 %214 }
 0x107   :  { %v219_v21 = vpop.permute.xlu1 %218 }
 0x10a   :  { %v223_v23 = vpop.permute.xlu0 %222 }
 0x10b   :  { %v221_v24 = vpop.permute.xlu1 %220 }
 0x10c   :  { %v228_v30 = vsel %vm224_vm8, %v221_v24, %v223_v23  ;;  %v227_v32 = vsel %vm224_vm8, %v219_v21, %v221_v24 }
 0x10d   :  { %3761 = vmatprep.subr.msk.mxu1 %vm233_vm9, %v228_v30 }
 0x10e   :  { %3762 = vmatpush1.msk.msra.mxu1 %vm233_vm9, %v227_v32  ;;  %v217_v35 = vpop.permute.xlu0 %216 }
 0x10f   :  { %3767 = vmatprep.subr.msk.mxu1 %vm233_vm9, %v182_v51  ;;  %v226_v45 = vsel %vm224_vm8, %v217_v35, %v219_v21  ;;  %3763 = vmatmul.mubr.msk.f32.vlgmr.msra.gmra.mrb[0].mxu1 %vm229_vm10, %v142_v33  ;;  %v225_v53 = vsel %vm224_vm8, %v215_v12, %v217_v35  ;;  %v573_v6 = vpop.permute.xlu1 %572 }
 0x110   :  { %3758 = vmatprep.subr.msk.mxu0 %vm233_vm9, %v226_v45  ;;  %3768 = vmatpush1.msk.msra.mxu1 %vm233_vm9, %v181_v38  ;;  %v143_v38 = vld [vmem:[%s4877_s1 + $0x4] sm:$0x3] }
 0x111   :  { %3759 = vmatpush1.msk.msra.mxu0 %vm233_vm9, %v225_v53  ;;  %534 = vmatprep.mubr.f32.mxu1 %v4883_v3 }
 0x112   :  { %3764 = vmatprep.subr.msk.mxu0 %vm233_vm9, %v180_v50  ;;  %v776_v60 = vpop.permute.xlu0 %775  ;;  %3760 = vmatmul.mubr.msk.f32.vlgmr.msra.gmra.mrb[0].mxu0 %vm229_vm10, %v142_v33 }
 0x113   :  { %3765 = vmatpush1.msk.msra.mxu0 %vm233_vm9, %v179_v44  ;;  %463 = vmatprep.mubr.f32.mxu0 %v4883_v3 }
 0x116   :  { %v784_v8 = vpop.permute.xlu0 %783 }
 0x117   :  { %v780_v11 = vpop.permute.xlu1 %779  ;;  %3769 = vmatmul.mubr.msk.f32.vlgmr.msra.gmra.mrb[0].mxu1 %vm229_vm10, %v141_v59 }
 0x118   :  { %733 = vmatprep.mubr.f32.mxu1 %v4883_v3 }
 0x11a   :  { %v778_v43 = vpop.permute.xlu0 %777  ;;  %3766 = vmatmul.mubr.msk.f32.vlgmr.msra.gmra.mrb[0].mxu0 %vm229_vm10, %v141_v59 }
 0x11b   :  { %v782_v12 = vpop.permute.xlu1 %781  ;;  %662 = vmatprep.mubr.f32.mxu0 %v4883_v3  ;;  %v787_v50 = vsel %vm785_vm12, %v778_v43, %v780_v11  ;;  %v786_v59 = vsel %vm785_vm12, %v776_v60, %v778_v43  ;;  %v144_v60 = vld [vmem:[%s4877_s1 + $0x6] sm:$0x3] }
 0x11c   :  { %v789_v45 = vsel %vm785_vm12, %v782_v12, %v784_v8  ;;  %v788_v44 = vsel %vm785_vm12, %v780_v11, %v782_v12 }
 0x11e   :  { %v577_v21 = vpop.permute.xlu0 %576 }
 0x11f   :  { %v581_v23 = vpop.permute.xlu1 %580 }
 0x122   :  { %v579_v24 = vpop.permute.xlu0 %578 }
 0x123   :  { %v585_v30 = vsel %vm582_vm11, %v577_v21, %v579_v24  ;;  %v586_v32 = vsel %vm582_vm11, %v579_v24, %v581_v23  ;;  %v575_v33 = vpop.permute.xlu1 %574 }
 0x124   :  { %v583_v51 = vsel %vm582_vm11, %v573_v6, %v575_v33  ;;  %v584_v35 = vsel %vm582_vm11, %v575_v33, %v577_v21  ;;  %3773 = vmatprep.subr.msk.mxu1 %vm233_vm9, %v586_v32 }
 0x125   :  { %3770 = vmatprep.subr.msk.mxu0 %vm233_vm9, %v584_v35  ;;  %3774 = vmatpush1.msk.msra.mxu1 %vm233_vm9, %v585_v30  ;;  %v145_v35 = vld [vmem:[%s4877_s1 + $0x8] sm:$0x3] }
 0x126   :  { %3771 = vmatpush1.msk.msra.mxu0 %vm233_vm9, %v583_v51  ;;  %3779 = vmatprep.subr.msk.mxu1 %vm233_vm9, %v789_v45  ;;  %v954_v53 = vpop.permute.xlu0 %953 }
 0x127   :  { %v952_v6 = vpop.permute.xlu1 %951  ;;  %3772 = vmatmul.mubr.msk.f32.vlgmr.msra.gmra.mrb[0].mxu0 %vm229_vm10, %v143_v38  ;;  %3775 = vmatmul.mubr.msk.f32.vlgmr.msra.gmra.mrb[0].mxu1 %vm229_vm10, %v143_v38 }
 0x128   :  { %v961_v8 = vsel %vm959_vm13, %v952_v6, %v954_v53  ;;  %3776 = vmatprep.subr.msk.mxu0 %vm233_vm9, %v787_v50  ;;  %3780 = vmatpush1.msk.msra.mxu1 %vm233_vm9, %v788_v44 }
 0x129   :  { %3777 = vmatpush1.msk.msra.mxu0 %vm233_vm9, %v786_v59  ;;  %865 = vmatprep.mubr.f32.mxu0 %v4883_v3 }
 0x12a   :  { %3782 = vmatprep.subr.msk.mxu0 %vm233_vm9, %v961_v8  ;;  %v956_v11 = vpop.permute.xlu0 %955  ;;  %936 = vmatprep.mubr.f32.mxu1 %v4883_v3  ;;  %v146_v8 = vld [vmem:[%s4877_s1 + $0xa] sm:$0x3] }
 0x12b   :  { %v950_v12 = vpop.permute.xlu1 %949  ;;  %v962_v30 = vsel %vm959_vm13, %v954_v53, %v956_v11 }
 0x12c   :  { %v960_v21 = vsel %vm959_vm13, %v950_v12, %v952_v6 }
 0x12e   :  { %v1155_v43 = vpop.permute.xlu0 %1154 }
 0x12f   :  { %v958_v23 = vpop.permute.xlu1 %957  ;;  %3778 = vmatmul.mubr.msk.f32.vlgmr.msra.gmra.mrb[0].mxu0 %vm229_vm10, %v144_v60  ;;  %3781 = vmatmul.mubr.msk.f32.vlgmr.msra.gmra.mrb[0].mxu1 %vm229_vm10, %v144_v60 }
 0x130   :  { %v963_v24 = vsel %vm959_vm13, %v956_v11, %v958_v23  ;;  %3783 = vmatpush1.msk.msra.mxu0 %vm233_vm9, %v960_v21  ;;  %1039 = vmatprep.mubr.f32.mxu0 %v4883_v3 }
 0x131   :  { %3785 = vmatprep.subr.msk.mxu1 %vm233_vm9, %v963_v24  ;;  %1110 = vmatprep.mubr.f32.mxu1 %v4883_v3 }
 0x132   :  { %3786 = vmatpush1.msk.msra.mxu1 %vm233_vm9, %v962_v30  ;;  %v1153_v32 = vpop.permute.xlu0 %1152 }
 0x133   :  { %v1157_v33 = vpop.permute.xlu1 %1156  ;;  %v1163_v45 = vsel %vm1162_vm14, %v1153_v32, %v1155_v43  ;;  %v147_v32 = vld [vmem:[%s4877_s1 + $0xc] sm:$0x3] }
 0x134   :  { %v1164_v51 = vsel %vm1162_vm14, %v1155_v43, %v1157_v33 }
 0x135   :  { %3788 = vmatprep.subr.msk.mxu0 %vm233_vm9, %v1164_v51 }
 0x136   :  { %v1161_v38 = vpop.permute.xlu0 %1160 }
 0x137   :  { %v1159_v53 = vpop.permute.xlu1 %1158  ;;  %3784 = vmatmul.mubr.msk.f32.vlgmr.msra.gmra.mrb[0].mxu0 %vm229_vm10, %v145_v35  ;;  %3787 = vmatmul.mubr.msk.f32.vlgmr.msra.gmra.mrb[0].mxu1 %vm229_vm10, %v145_v35 }
 0x138   :  { %v1165_v50 = vsel %vm1162_vm14, %v1157_v33, %v1159_v53  ;;  %v1166_v44 = vsel %vm1162_vm14, %v1159_v53, %v1161_v38  ;;  %3789 = vmatpush1.msk.msra.mxu0 %vm233_vm9, %v1163_v45  ;;  %1242 = vmatprep.mubr.f32.mxu0 %v4883_v3 }
 0x139   :  { %3791 = vmatprep.subr.msk.mxu1 %vm233_vm9, %v1166_v44  ;;  %1313 = vmatprep.mubr.f32.mxu1 %v4883_v3 }
 0x13a   :  { %3792 = vmatpush1.msk.msra.mxu1 %vm233_vm9, %v1165_v50  ;;  %v1561_v6 = vpop.permute.xlu0 %1560 }
 0x13b   :  { %v1356_v59 = vpop.permute.xlu1 %1355 }
 0x13e   :  { %v1360_v11 = vpop.permute.xlu0 %1359 }
 0x13f   :  { %v1364_v12 = vpop.permute.xlu1 %1363  ;;  %3790 = vmatmul.mubr.msk.f32.vlgmr.msra.gmra.mrb[0].mxu0 %vm229_vm10, %v146_v8  ;;  %3793 = vmatmul.mubr.msk.f32.vlgmr.msra.gmra.mrb[0].mxu1 %vm229_vm10, %v146_v8 }
 0x140   :  { %1445 = vmatprep.mubr.f32.mxu0 %v4883_v3  ;;  %1516 = vmatprep.mubr.f32.mxu1 %v4883_v3 }
 0x142   :  { %v1362_v60 = vpop.permute.xlu0 %1361 }
 0x143   :  { %v1368_v43 = vsel %vm1365_vm15, %v1360_v11, %v1362_v60  ;;  %v1369_v21 = vsel %vm1365_vm15, %v1362_v60, %v1364_v12  ;;  %v1358_v23 = vpop.permute.xlu1 %1357 }
 0x144   :  { %v1366_v24 = vsel %vm1365_vm15, %v1356_v59, %v1358_v23  ;;  %v1367_v30 = vsel %vm1365_vm15, %v1358_v23, %v1360_v11  ;;  %3797 = vmatprep.subr.msk.mxu1 %vm233_vm9, %v1369_v21  ;;  %v148_v59 = vld [vmem:[%s4877_s1 + $0xe] sm:$0x3] }
 0x145   :  { %3794 = vmatprep.subr.msk.mxu0 %vm233_vm9, %v1367_v30  ;;  %3798 = vmatpush1.msk.msra.mxu1 %vm233_vm9, %v1368_v43  ;;  %v149_v43 = vld [vmem:[%s4877_s1 + $0x10] sm:$0x3] }
 0x146   :  { %3795 = vmatpush1.msk.msra.mxu0 %vm233_vm9, %v1366_v24  ;;  %v1559_v33 = vpop.permute.xlu0 %1558 }
 0x147   :  { %v1563_v51 = vpop.permute.xlu1 %1562  ;;  %3796 = vmatmul.mubr.msk.f32.vlgmr.msra.gmra.mrb[0].mxu0 %vm229_vm10, %v147_v32  ;;  %3799 = vmatmul.mubr.msk.f32.vlgmr.msra.gmra.mrb[0].mxu1 %vm229_vm10, %v147_v32  ;;  %v1569_v38 = vsel %vm1568_vm1, %v1559_v33, %v1561_v6 }
 0x148   :  { %v1570_v35 = vsel %vm1568_vm1, %v1561_v6, %v1563_v51  ;;  %1648 = vmatprep.mubr.f32.mxu0 %v4883_v3  ;;  %1719 = vmatprep.mubr.f32.mxu1 %v4883_v3 }
 0x149   :  { %3800 = vmatprep.subr.msk.mxu0 %vm233_vm9, %v1570_v35 }
 0x14a   :  { %3801 = vmatpush1.msk.msra.mxu0 %vm233_vm9, %v1569_v38  ;;  %v1567_v45 = vpop.permute.xlu0 %1566 }
 0x14b   :  { %v1565_v53 = vpop.permute.xlu1 %1564 }
 0x14c   :  { %v1571_v50 = vsel %vm1568_vm1, %v1563_v51, %v1565_v53  ;;  %v1572_v44 = vsel %vm1568_vm1, %v1565_v53, %v1567_v45 }
 0x14d   :  { %3803 = vmatprep.subr.msk.mxu1 %vm233_vm9, %v1572_v44 }
 0x14e   :  { %3804 = vmatpush1.msk.msra.mxu1 %vm233_vm9, %v1571_v50  ;;  %v1766_v6 = vpop.permute.xlu0 %1765 }
 0x14f   :  { %v1762_v8 = vpop.permute.xlu1 %1761  ;;  %3802 = vmatmul.mubr.msk.f32.vlgmr.msra.gmra.mrb[0].mxu0 %vm229_vm10, %v148_v59  ;;  %3805 = vmatmul.mubr.msk.f32.vlgmr.msra.gmra.mrb[0].mxu1 %vm229_vm10, %v148_v59 }
 0x150   :  { %1851 = vmatprep.mubr.f32.mxu0 %v4883_v3  ;;  %1922 = vmatprep.mubr.f32.mxu1 %v4883_v3 }
 0x152   :  { %v1768_v21 = vpop.permute.xlu0 %1767 }
 0x153   :  { %v1764_v11 = vpop.permute.xlu1 %1763  ;;  %v1774_v30 = vsel %vm1771_vm2, %v1766_v6, %v1768_v21 }
 0x154   :  { %v1772_v12 = vsel %vm1771_vm2, %v1762_v8, %v1764_v11  ;;  %v1773_v60 = vsel %vm1771_vm2, %v1764_v11, %v1766_v6 }
 0x155   :  { %3806 = vmatprep.subr.msk.mxu0 %vm233_vm9, %v1773_v60 }
 0x156   :  { %3807 = vmatpush1.msk.msra.mxu0 %vm233_vm9, %v1772_v12 }
 0x157   :  { %v1770_v23 = vpop.permute.xlu1 %1769  ;;  %3808 = vmatmul.mubr.msk.f32.vlgmr.msra.gmra.mrb[0].mxu0 %vm229_vm10, %v149_v43 }
 0x158   :  { %v1775_v24 = vsel %vm1771_vm2, %v1768_v21, %v1770_v23  ;;  %2140 = vmatprep.mubr.f32.mxu0 %v4883_v3 }
 0x159   :  { %3809 = vmatprep.subr.msk.mxu1 %vm233_vm9, %v1775_v24 }
 0x15a   :  { %3810 = vmatpush1.msk.msra.mxu1 %vm233_vm9, %v1774_v30 }
 0x15b   :  { %3811 = vmatmul.mubr.msk.f32.vlgmr.msra.gmra.mrb[0].mxu1 %vm229_vm10, %v149_v43 }
 0x15c   :  { %2211 = vmatprep.mubr.f32.mxu1 %v4883_v3 }
 0x22a   :  { %v1853_v32 = vpop.f32.mrb[0].mxu0 }
 0x22b   :  { %v1934_v33 = vsel %vm1933_vm4, %v1853_v32, 0.0  ;;  %v1855_v51 = vpop.f32.mrb[1].mxu0 }
 0x22c   :  { %v1935_v35 = vsel %vm1933_vm4, %v1855_v51, 0.0 }
 0x22d   :  { %v1936_v38 = vadd.f32 %v1935_v35, %v1934_v33 }
 0x22e   :  { %v1924_v45 = vpop.f32.mrb[0].mxu1 }
 0x22f   :  { %v1937_v53 = vsel %vm1933_vm4, %v1924_v45, 0.0  ;;  %v1926_v50 = vpop.f32.mrb[1].mxu1 }
 0x230   :  { %v1938_v44 = vadd.f32 %v1937_v53, %v1936_v38  ;;  %v1939_v59 = vsel %vm1933_vm4, %v1926_v50, 0.0 }
 0x232   :  { %v1940_v8 = vadd.f32 %v1939_v59, %v1938_v44 }
 0x234   :  { %1941 = vadd.xlane.f32.xlu0 %v1940_v8 }
 0x2c1   :  { %v1942_v6 = vpop.xlane.xlu0 %1941 }
 0x2c2   :  { %v1943_v11 = vmul.f32 0.001953125, %v1942_v6 }
 0x2c4   :  { %v1944_v12 = vsub.f32 %v1853_v32, %v1943_v11  ;;  %v1945_v60 = vsub.f32 %v1855_v51, %v1943_v11  ;;  %v1946_v43 = vsub.f32 %v1924_v45, %v1943_v11  ;;  %v1947_v21 = vsub.f32 %v1926_v50, %v1943_v11  ;;  %v4552_v51 = vld [vmem:[%s4879_s3] sm:$0xf] }
 0x2c5   :  { %v4068_v32 = vmov 0   ;;  %v4069_v45 = vmov 1  }
 0x2c6   :  { %v1948_v23 = vmul.f32 %v1944_v12, %v1944_v12  ;;  %v1949_v24 = vmul.f32 %v1945_v60, %v1945_v60  ;;  %v1950_v30 = vmul.f32 %v1946_v43, %v1946_v43  ;;  %v1951_v56 = vmul.f32 %v1947_v21, %v1947_v21  ;;  %4000 = vset.pattern.permute.xlu0 %v4068_v32 }
 0x2c7   :  { %4001 = vset.pattern.permute.xlu1 %v4069_v45 }
 0x2c8   :  { %v1952_v33 = vsel %vm1933_vm4, %v1948_v23, 0.0  ;;  %v1953_v35 = vsel %vm1933_vm4, %v1949_v24, 0.0  ;;  %v1955_v38 = vsel %vm1933_vm4, %v1950_v30, 0.0  ;;  %v1957_v44 = vsel %vm1933_vm4, %v1951_v56, 0.0 }
 0x2c9   :  { %v1954_v2 = vadd.f32 %v1953_v35, %v1952_v33 }
 0x2cb   :  { %v1956_v53 = vadd.f32 %v1955_v38, %v1954_v2 }
 0x2cd   :  { %v1958_v59 = vadd.f32 %v1957_v44, %v1956_v53 }
 0x2cf   :  { %1959 = vadd.xlane.f32.xlu1 %v1958_v59 }
 0x2e0   :  { %1976 = vperm.xlu1 %4001, %v4552_v51  }
 0x35c   :  { %v1960_v50 = vpop.xlane.xlu1 %1959 }
 0x35d   :  { %v1961_v8 = vmul.f32 0.001953125, %v1960_v50 }
 0x35f   :  { %v1962_v6 = vadd.f32 1e-05, %v1961_v8 }
 0x360   :  { %v1977_v23 = vpop.permute.xlu1 %1976 }
 0x361   :  { %4005 = vrsqrt.f32 %v1962_v6 }
 0x36b   :  { %v4006_v2 = vpop.eup %4005 }
 0x36c   :  { %v1964_v56 = vmul.f32 %v4006_v2, %v4552_v51 }
 0x36e   :  { %1967 = vperm.xlu0 %4000, %v1964_v56  }
 0x3ed   :  { %v1968_v11 = vpop.permute.xlu0 %1967 }
 0x3ee   :  { %v1970_v24 = vmul.f32 %v1968_v11, %v1944_v12  ;;  %v1971_v30 = vmul.f32 %v1968_v11, %v1945_v60  ;;  %v1972_v33 = vmul.f32 %v1968_v11, %v1946_v43  ;;  %v1973_v35 = vmul.f32 %v1968_v11, %v1947_v21 }
 0x3f0   :  { %v1979_v38 = vadd.f32 %v1977_v23, %v1970_v24  ;;  %v1980_v53 = vadd.f32 %v1977_v23, %v1971_v30  ;;  %v1981_v44 = vadd.f32 %v1977_v23, %v1972_v33  ;;  %v1982_v59 = vadd.f32 %v1977_v23, %v1973_v35 }
 0x3f2   :  { %v1983_v32 = vmin.f32 %v1979_v38, 0.0  ;;  %v1984_v45 = vmin.f32 %v1980_v53, 0.0  ;;  %v1985_v3 = vmin.f32 %v1981_v44, 0.0  ;;  %v1986_v50 = vmin.f32 %v1982_v59, 0.0 }
 0x3f3   :  { %vm2003_vm5 = vcmp.gt.f32.partialorder %v1979_v38, 0.0  ;;  %vm2004_vm6 = vcmp.gt.f32.partialorder %v1980_v53, 0.0  ;;  %vm2005_vm7 = vcmp.gt.f32.partialorder %v1981_v44, 0.0  ;;  %vm2006_vm10 = vcmp.gt.f32.partialorder %v1982_v59, 0.0 }
 0x3f4   :  { %v1987_v8 = vmul.f32 1.442695, %v1983_v32  ;;  %v1989_v6 = vmul.f32 1.442695, %v1984_v45  ;;  %v1991_v4 = vmul.f32 1.442695, %v1985_v3 }
 0x3f5   :  { %v1993_v2 = vmul.f32 1.442695, %v1986_v50 }
 0x3f6   :  { %4007 = vpow2.f32 %v1987_v8 }
 0x3f7   :  { %4009 = vpow2.f32 %v1989_v6 }
 0x3f8   :  { %4011 = vpow2.f32 %v1991_v4 }
 0x3f9   :  { %4013 = vpow2.f32 %v1993_v2 }
 0x400   :  { %v4008_v12 = vpop.eup %4007 }
 0x401   :  { %v4010_v60 = vpop.eup %4009  ;;  %v3812_v43 = vadd.f32 -1.0, %v4008_v12 }
 0x402   :  { %v4012_v21 = vpop.eup %4011  ;;  %v3813_v56 = vadd.f32 -1.0, %v4010_v60 }
 0x403   :  { %v1999_v11 = vmul.f32 1.6732632, %v3812_v43  ;;  %v3814_v24 = vadd.f32 -1.0, %v4012_v21  ;;  %v4014_v23 = vpop.eup %4013 }
 0x404   :  { %v2000_v30 = vmul.f32 1.6732632, %v3813_v56  ;;  %v3815_v45 = vadd.f32 -1.0, %v4014_v23 }
 0x405   :  { %v2007_v33 = vsel %vm2003_vm5, %v1979_v38, %v1999_v11  ;;  %v2001_v3 = vmul.f32 1.6732632, %v3814_v24 }
 0x406   :  { %v2011_v35 = vmul.f32 1.050701, %v2007_v33  ;;  %v2008_v32 = vsel %vm2004_vm6, %v1980_v53, %v2000_v30  ;;  %v2002_v8 = vmul.f32 1.6732632, %v3815_v45 }
 0x407   :  { %v2012_v4 = vmul.f32 1.050701, %v2008_v32  ;;  %v2009_v50 = vsel %vm2005_vm7, %v1981_v44, %v2001_v3 }
 0x408   :  { %2019 = vrot.lane.b32.xlu1 %v2011_v35, %s4051_s17  ;;  %v2013_v6 = vmul.f32 1.050701, %v2009_v50  ;;  %v2010_v2 = vsel %vm2006_vm10, %v1982_v59, %v2002_v8  ;;  %v151_v50 = vld [vmem:[%s4878_s2 + $0x4] sm:$0xf] }
 0x409   :  { %v2014_v12 = vmul.f32 1.050701, %v2010_v2 }
 0x40c   :  { %2021 = vrot.lane.b32.xlu1 %v2012_v4, %s4051_s17 }
 0x410   :  { %2023 = vrot.lane.b32.xlu1 %v2013_v6, %s4051_s17 }
 0x414   :  { %2025 = vrot.lane.b32.xlu1 %v2014_v12, %s4051_s17 }
 0x47a   :  { %v2020_v38 = vpop.permute.xlu1 %2019 }
 0x47b   :  { %v4566_v43 = vsel %vm168_vm0, 0.0, %v2020_v38 }
 0x47c   :  { %v2041_v11 = vmul.f32 %v4178_v42, %v4566_v43  ;;  %v2037_v6 = vmul.f32 %v4566_v43, %v4147_v63 }
 0x47e   :  { %v2022_v53 = vpop.permute.xlu1 %2021 }
 0x47f   :  { %v4561_v60 = vsel %vm168_vm0, %v2020_v38, %v2022_v53 }
 0x480   :  { %2741 = vrot.lane.b32.xlu1 %v4561_v60, %s4063_s30  ;;  %v2042_v56 = vmul.f32 %v4561_v60, %v4213_v58  ;;  %v2376_v58 = vmul.f32 %v4561_v60, %v4268_v26  ;;  %v2038_v8 = vmul.f32 %v4561_v60, %v4155_v9 }
 0x482   :  { %v2024_v44 = vpop.permute.xlu1 %2023 }
 0x483   :  { %v4569_v21 = vsel %vm168_vm0, %v2022_v53, %v2024_v44 }
 0x484   :  { %2739 = vrot.lane.b32.xlu1 %v4566_v43, %s4063_s30  ;;  %2743 = vrot.lane.b32.xlu0 %v4569_v21, %s4063_s30  ;;  %v2043_v23 = vmul.f32 %v4569_v21, %v4189_v46  ;;  %v2377_v46 = vmul.f32 %v4569_v21, %v4252_v20  ;;  %v2375_v20 = vmul.f32 %v4566_v43, %v4191_v47 }
 0x485   :  { %v2558_v47 = vmul.f32 %v4569_v21, %v4237_v15  ;;  %v2912_v15 = vmul.f32 %v4569_v21, %v4300_v41  ;;  %v3092_v41 = vmul.f32 %v4561_v60, %v4344_v19  ;;  %v2039_v9 = vmul.f32 %v4569_v21, %v4162_v14 }
 0x486   :  { %v2026_v59 = vpop.permute.xlu1 %2025 }
 0x487   :  { %v4580_v24 = vsel %vm168_vm0, %v2026_v59, 0.0  ;;  %v4589_v33 = vsel %vm168_vm0, %v2024_v44, %v2026_v59  ;;  %v4887_v44 = vmov 0.0   ;;  %v150_v59 = vld [vmem:[%s4878_s2] sm:$0xf] }
 0x488   :  { %2053 = vrot.lane.b32.xlu1 %v2042_v56, %s4060_s27  ;;  %2051 = vrot.lane.b32.xlu0 %v2041_v11, %s4060_s27  ;;  %v2045_v30 = vmul.f32 %v4176_v39, %v4580_v24  ;;  %v2044_v42 = vmul.f32 %v4589_v33, %v4204_v52  ;;  %v2378_v39 = vmul.f32 %v4589_v33, %v4264_v25 }
 0x489   :  { %v2557_v52 = vmul.f32 %v4561_v60, %v4242_v17  ;;  %v2556_v25 = vmul.f32 %v4226_v5, %v4566_v43  ;;  %v2379_v26 = vmul.f32 %v4580_v24, %v4222_v62  ;;  %v2560_v17 = vmul.f32 %v4232_v10, %v4580_v24 }
 0x48a   :  { %v2911_v5 = vmul.f32 %v4561_v60, %v4288_v34  ;;  %v2559_v62 = vmul.f32 %v4589_v33, %v4246_v18  ;;  %v2910_v10 = vmul.f32 %v4280_v31, %v4566_v43  ;;  %v2914_v34 = vmul.f32 %v4296_v37, %v4580_v24 }
 0x48b   :  { %v2913_v18 = vmul.f32 %v4589_v33, %v4313_v54  ;;  %v3093_v31 = vmul.f32 %v4569_v21, %v4332_v7  ;;  %v3094_v37 = vmul.f32 %v4589_v33, %v4341_v16  ;;  %v3091_v54 = vmul.f32 %v4566_v43, %v4276_v29 }
 0x48c   :  { %2055 = vrot.lane.b32.xlu1 %v2043_v23, %s4060_s27  ;;  %2059 = vrot.lane.b32.xlu0 %v2045_v30, %s4060_s27  ;;  %v3273_v7 = vmul.f32 %v4561_v60, %v4324_v61  ;;  %v3095_v19 = vmul.f32 %v4580_v24, %v4316_v55  ;;  %v3272_v16 = vmul.f32 %v4306_v49, %v4566_v43  ;;  %v152_v23 = vld [vmem:[%s4878_s2 + $0x8] sm:$0xf] }
 0x48d   :  { %v3274_v29 = vmul.f32 %v4569_v21, %v4358_v28  ;;  %v3276_v61 = vmul.f32 %v4354_v27, %v4580_v24  ;;  %v3275_v55 = vmul.f32 %v4589_v33, %v4368_v36  ;;  %v3455_v49 = vmul.f32 %v4569_v21, %v4373_v40 }
 0x48e   :  { %v3454_v28 = vmul.f32 %v4561_v60, %v4390_v1  ;;  %v3456_v27 = vmul.f32 %v4589_v33, %v4384_v57  ;;  %v3453_v36 = vmul.f32 %v4566_v43, %v4348_v22  ;;  %v3457_v40 = vmul.f32 %v4580_v24, %v4379_v48 }
 0x48f   :  { %v2040_v63 = vmul.f32 %v4589_v33, %v4160_v13 }
 0x490   :  { %2745 = vrot.lane.b32.xlu0 %v4589_v33, %s4063_s30  ;;  %2057 = vrot.lane.b32.xlu1 %v2044_v42, %s4060_s27 }
 0x494   :  { %2389 = vrot.lane.b32.xlu0 %v2377_v46, %s4061_s28  ;;  %2747 = vrot.lane.b32.xlu1 %v4580_v24, %s4063_s30 }
 0x498   :  { %2391 = vrot.lane.b32.xlu0 %v2378_v39, %s4061_s28  ;;  %2387 = vrot.lane.b32.xlu1 %v2376_v58, %s4061_s28 }
 0x49c   :  { %2568 = vrot.lane.b32.xlu0 %v2557_v52, %s4062_s29  ;;  %2385 = vrot.lane.b32.xlu1 %v2375_v20, %s4061_s28  ;;  %v153_v20 = vld [vmem:[%s4878_s2 + $0xc] sm:$0xf] }
 0x4a0   :  { %2566 = vrot.lane.b32.xlu0 %v2556_v25, %s4062_s29  ;;  %2393 = vrot.lane.b32.xlu1 %v2379_v26, %s4061_s28 }
 0x4a4   :  { %2574 = vrot.lane.b32.xlu0 %v2560_v17, %s4062_s29  ;;  %2570 = vrot.lane.b32.xlu1 %v2558_v47, %s4062_s29 }
 0x4a8   :  { %2922 = vrot.lane.b32.xlu0 %v2911_v5, %s4064_s5  ;;  %2572 = vrot.lane.b32.xlu1 %v2559_v62, %s4062_s29 }
 0x4ac   :  { %2920 = vrot.lane.b32.xlu0 %v2910_v10, %s4064_s5  ;;  %2924 = vrot.lane.b32.xlu1 %v2912_v15, %s4064_s5 }
 0x4b0   :  { %2928 = vrot.lane.b32.xlu0 %v2914_v34, %s4064_s5  ;;  %2926 = vrot.lane.b32.xlu1 %v2913_v18, %s4064_s5 }
 0x4b4   :  { %3105 = vrot.lane.b32.xlu0 %v3093_v31, %s4066_s7  ;;  %3103 = vrot.lane.b32.xlu1 %v3092_v41, %s4066_s7 }
 0x4b8   :  { %3107 = vrot.lane.b32.xlu0 %v3094_v37, %s4066_s7  ;;  %3101 = vrot.lane.b32.xlu1 %v3091_v54, %s4066_s7  ;;  %v154_v37 = vld [vmem:[%s4878_s2 + $0x10] sm:$0xf] }
 0x4bc   :  { %3284 = vrot.lane.b32.xlu0 %v3273_v7, %s4065_s6  ;;  %3109 = vrot.lane.b32.xlu1 %v3095_v19, %s4066_s7 }
 0x4c0   :  { %3282 = vrot.lane.b32.xlu0 %v3272_v16, %s4065_s6  ;;  %3286 = vrot.lane.b32.xlu1 %v3274_v29, %s4065_s6 }
 0x4c4   :  { %3290 = vrot.lane.b32.xlu0 %v3276_v61, %s4065_s6  ;;  %3288 = vrot.lane.b32.xlu1 %v3275_v55, %s4065_s6 }
 0x4c8   :  { %3467 = vrot.lane.b32.xlu0 %v3455_v49, %s4067_s8  ;;  %3465 = vrot.lane.b32.xlu1 %v3454_v28, %s4067_s8  ;;  %v155_v28 = vld [vmem:[%s4878_s2 + $0x14] sm:$0xf] }
 0x4cc   :  { %3469 = vrot.lane.b32.xlu0 %v3456_v27, %s4067_s8  ;;  %3463 = vrot.lane.b32.xlu1 %v3453_v36, %s4067_s8 }
 0x4d0   :  { %3471 = vrot.lane.b32.xlu1 %v3457_v40, %s4067_s8 }
 0x4f2   :  { %v4690_v1 = vpop.permute.xlu1 %2741 }
 0x4f6   :  { %v4692_v35 = vpop.permute.xlu0 %2743  ;;  %v4694_v32 = vpop.permute.xlu1 %2739 }
 0x4f7   :  { %v2750_v26 = vsel %vm959_vm13, %v4690_v1, %v4692_v35  ;;  %v2749_v17 = vsel %vm959_vm13, %v4694_v32, %v4690_v1 }
 0x4fa   :  { %v2052_v3 = vpop.permute.xlu0 %2051  ;;  %v2054_v57 = vpop.permute.xlu1 %2053 }
 0x4fb   :  { %v2061_v48 = vsel %vm224_vm8, %v2052_v3, %v2054_v57  ;;  %v156_v3 = vld [vmem:[%s4878_s2 + $0x18] sm:$0xf] }
 0x4fe   :  { %v2060_v45 = vpop.permute.xlu0 %2059  ;;  %v2056_v4 = vpop.permute.xlu1 %2055 }
 0x4ff   :  { %v2062_v22 = vsel %vm224_vm8, %v2054_v57, %v2056_v4 }
 0x500   :  { %3816 = vmatprep.subr.msk.mxu0 %vm1933_vm4, %v2062_v22 }
 0x501   :  { %3817 = vmatpush1.msk.msra.mxu0 %vm1933_vm4, %v2061_v48 }
 0x502   :  { %v4707_v2 = vpop.permute.xlu0 %2745  ;;  %3818 = vmatmul.mubr.msk.f32.vlgmr.msra.gmra.mrb[2].mxu0 %vm553_vm3, %v151_v50  ;;  %3822 = vmatprep.subr.msk.mxu0 %vm1933_vm4, %v2038_v8  ;;  %v2058_v12 = vpop.permute.xlu1 %2057 }
 0x503   :  { %v2063_v38 = vsel %vm224_vm8, %v2056_v4, %v2058_v12  ;;  %v2064_v53 = vsel %vm224_vm8, %v2058_v12, %v2060_v45  ;;  %3823 = vmatpush1.msk.msra.mxu0 %vm1933_vm4, %v2037_v6  ;;  %2297 = vmatprep.mubr.f32.mxu0 %v4887_v44  ;;  %v2751_v34 = vsel %vm959_vm13, %v4692_v35, %v4707_v2  ;;  %v157_v12 = vld [vmem:[%s4878_s2 + $0x1c] sm:$0xf] }
 0x504   :  { %3819 = vmatprep.subr.msk.mxu1 %vm1933_vm4, %v2064_v53 }
 0x505   :  { %3820 = vmatpush1.msk.msra.mxu1 %vm1933_vm4, %v2063_v38 }
 0x506   :  { %v2390_v60 = vpop.permute.xlu0 %2389  ;;  %3821 = vmatmul.mubr.msk.f32.vlgmr.msra.gmra.mrb[2].mxu1 %vm553_vm3, %v151_v50  ;;  %3825 = vmatprep.subr.msk.mxu1 %vm1933_vm4, %v2040_v63  ;;  %v2748_v43 = vpop.permute.xlu1 %2747 }
 0x507   :  { %3826 = vmatpush1.msk.msra.mxu1 %vm1933_vm4, %v2039_v9  ;;  %2368 = vmatprep.mubr.f32.mxu1 %v4887_v44  ;;  %v2752_v15 = vsel %vm959_vm13, %v4707_v2, %v2748_v43  ;;  %v158_v43 = vld [vmem:[%s4878_s2 + $0x20] sm:$0xf]  ;;  %s4072_s2 = smov [#allocation2]  }
 0x508   :  { %s3734_s20 = sshll.u32 %s4072_s2, 4  ;;  %s3735_s20 = int_to_ptr.vmem [resolvable:$true] %s3734_s20 }
 0x509   :  { %s4027_s25 = scalar_lea.vmem %s3735_s20, 256  ;;  %p4032_p1 = scmp.lt.s32.totalorder %s3735_s20, %s3735_s20 }
 0x50a   :  { %v2392_v13 = vpop.permute.xlu0 %2391  ;;  %3824 = vmatmul.mubr.msk.f32.vlgmr.msra.gmra.mrb[2].mxu0 %vm553_vm3, %v150_v59  ;;  %v2388_v56 = vpop.permute.xlu1 %2387  ;;  %p4028_p0 = scmp.ne.s32.totalorder %s3735_s20, %s4027_s25  ;;  %p4033_p2 = scmp.lt.s32.totalorder %s4027_s25, %s4027_s25 }
 0x50b   :  { %v2396_v14 = vsel %vm582_vm11, %v2388_v56, %v2390_v60  ;;  %2474 = vmatprep.mubr.f32.mxu0 %v4887_v44  ;;  %v2397_v46 = vsel %vm582_vm11, %v2390_v60, %v2392_v13 }
 0x50c   :  { %3828 = vmatprep.subr.msk.mxu0 %vm1933_vm4, %v2396_v14  ;;  %p4034_p3 = por %p4033_p2, %p4032_p1 }
 0x50e   :  { %v2569_v21 = vpop.permute.xlu0 %2568  ;;  %3827 = vmatmul.mubr.msk.f32.vlgmr.msra.gmra.mrb[2].mxu1 %vm553_vm3, %v150_v59  ;;  %v2386_v11 = vpop.permute.xlu1 %2385  ;;  %p4035_p4 = pnand %p4034_p3, %p4028_p0 }
 0x50f   :  { %v2395_v24 = vsel %vm582_vm11, %v2386_v11, %v2388_v56  ;;  %2545 = vmatprep.mubr.f32.mxu1 %v4887_v44 }
 0x510   :  { %3829 = vmatpush1.msk.msra.mxu0 %vm1933_vm4, %v2395_v24 }
 0x512   :  { %v2567_v30 = vpop.permute.xlu0 %2566  ;;  %3830 = vmatmul.mubr.msk.f32.vlgmr.msra.gmra.mrb[2].mxu0 %vm553_vm3, %v152_v23  ;;  %v2394_v33 = vpop.permute.xlu1 %2393 }
 0x513   :  { %v2398_v42 = vsel %vm582_vm11, %v2392_v13, %v2394_v33  ;;  %2655 = vmatprep.mubr.f32.mxu0 %v4887_v44  ;;  %v2576_v25 = vsel %vm785_vm12, %v2567_v30, %v2569_v21 }
 0x514   :  { %3831 = vmatprep.subr.msk.mxu1 %vm1933_vm4, %v2398_v42 }
 0x515   :  { %3832 = vmatpush1.msk.msra.mxu1 %vm1933_vm4, %v2397_v46 }
 0x516   :  { %v2575_v39 = vpop.permute.xlu0 %2574  ;;  %3833 = vmatmul.mubr.msk.f32.vlgmr.msra.gmra.mrb[2].mxu1 %vm553_vm3, %v152_v23  ;;  %v2571_v58 = vpop.permute.xlu1 %2570 }
 0x517   :  { %v2577_v52 = vsel %vm785_vm12, %v2569_v21, %v2571_v58  ;;  %2726 = vmatprep.mubr.f32.mxu1 %v4887_v44 }
 0x518   :  { %3834 = vmatprep.subr.msk.mxu0 %vm1933_vm4, %v2577_v52 }
 0x519   :  { %3835 = vmatpush1.msk.msra.mxu0 %vm1933_vm4, %v2576_v25 }
 0x51a   :  { %v2923_v47 = vpop.permute.xlu0 %2922  ;;  %3836 = vmatmul.mubr.msk.f32.vlgmr.msra.gmra.mrb[2].mxu0 %vm553_vm3, %v153_v20  ;;  %3840 = vmatprep.subr.msk.mxu0 %vm1933_vm4, %v2750_v26  ;;  %v2573_v5 = vpop.permute.xlu1 %2572 }
 0x51b   :  { %v2578_v62 = vsel %vm785_vm12, %v2571_v58, %v2573_v5  ;;  %v2579_v10 = vsel %vm785_vm12, %v2573_v5, %v2575_v39  ;;  %3841 = vmatpush1.msk.msra.mxu0 %vm1933_vm4, %v2749_v17  ;;  %2828 = vmatprep.mubr.f32.mxu0 %v4887_v44 }
 0x51c   :  { %3837 = vmatprep.subr.msk.mxu1 %vm1933_vm4, %v2579_v10 }
 0x51d   :  { %3838 = vmatpush1.msk.msra.mxu1 %vm1933_vm4, %v2578_v62 }
 0x51e   :  { %v2921_v18 = vpop.permute.xlu0 %2920  ;;  %3839 = vmatmul.mubr.msk.f32.vlgmr.msra.gmra.mrb[2].mxu1 %vm553_vm3, %v153_v20  ;;  %3843 = vmatprep.subr.msk.mxu1 %vm1933_vm4, %v2752_v15  ;;  %v2925_v31 = vpop.permute.xlu1 %2924 }
 0x51f   :  { %v2931_v41 = vsel %vm1162_vm14, %v2923_v47, %v2925_v31  ;;  %3844 = vmatpush1.msk.msra.mxu1 %vm1933_vm4, %v2751_v34  ;;  %2899 = vmatprep.mubr.f32.mxu1 %v4887_v44  ;;  %v2930_v54 = vsel %vm1162_vm14, %v2921_v18, %v2923_v47 }
 0x520   :  { %3846 = vmatprep.subr.msk.mxu0 %vm1933_vm4, %v2931_v41 }
 0x522   :  { %v2929_v7 = vpop.permute.xlu0 %2928  ;;  %3842 = vmatmul.mubr.msk.f32.vlgmr.msra.gmra.mrb[2].mxu0 %vm553_vm3, %v154_v37  ;;  %v2927_v19 = vpop.permute.xlu1 %2926 }
 0x523   :  { %3847 = vmatpush1.msk.msra.mxu0 %vm1933_vm4, %v2930_v54  ;;  %v2933_v16 = vsel %vm1162_vm14, %v2927_v19, %v2929_v7  ;;  %3009 = vmatprep.mubr.f32.mxu0 %v4887_v44  ;;  %v2932_v29 = vsel %vm1162_vm14, %v2925_v31, %v2927_v19  ;;  %v4070_v19 = vmov 2  }
 0x524   :  { %3849 = vmatprep.subr.msk.mxu1 %vm1933_vm4, %v2933_v16  ;;  %4002 = vset.pattern.permute.xlu0 %v4070_v19  ;;  %v4071_v16 = vmov 3  }
 0x525   :  { %4003 = vset.pattern.permute.xlu1 %v4071_v16 }
 0x526   :  { %v3106_v61 = vpop.permute.xlu0 %3105  ;;  %3845 = vmatmul.mubr.msk.f32.vlgmr.msra.gmra.mrb[2].mxu1 %vm553_vm3, %v154_v37  ;;  %v3104_v55 = vpop.permute.xlu1 %3103 }
 0x527   :  { %3850 = vmatpush1.msk.msra.mxu1 %vm1933_vm4, %v2932_v29  ;;  %v3112_v49 = vsel %vm1365_vm15, %v3104_v55, %v3106_v61  ;;  %3080 = vmatprep.mubr.f32.mxu1 %v4887_v44 }
 0x528   :  { %3852 = vmatprep.subr.msk.mxu0 %vm1933_vm4, %v3112_v49 }
 0x52a   :  { %v3108_v27 = vpop.permute.xlu0 %3107  ;;  %3848 = vmatmul.mubr.msk.f32.vlgmr.msra.gmra.mrb[2].mxu0 %vm553_vm3, %v155_v28  ;;  %v3102_v36 = vpop.permute.xlu1 %3101 }
 0x52b   :  { %v3111_v40 = vsel %vm1365_vm15, %v3102_v36, %v3104_v55  ;;  %3190 = vmatprep.mubr.f32.mxu0 %v4887_v44  ;;  %v3113_v57 = vsel %vm1365_vm15, %v3106_v61, %v3108_v27 }
 0x52c   :  { %3853 = vmatpush1.msk.msra.mxu0 %vm1933_vm4, %v3111_v40 }
 0x52e   :  { %v3285_v1 = vpop.permute.xlu0 %3284  ;;  %3851 = vmatmul.mubr.msk.f32.vlgmr.msra.gmra.mrb[2].mxu1 %vm553_vm3, %v155_v28  ;;  %v3110_v35 = vpop.permute.xlu1 %3109 }
 0x52f   :  { %v3114_v32 = vsel %vm1365_vm15, %v3108_v27, %v3110_v35  ;;  %3261 = vmatprep.mubr.f32.mxu1 %v4887_v44 }
 0x530   :  { %3855 = vmatprep.subr.msk.mxu1 %vm1933_vm4, %v3114_v32 }
 0x531   :  { %3856 = vmatpush1.msk.msra.mxu1 %vm1933_vm4, %v3113_v57 }
 0x532   :  { %v3283_v45 = vpop.permute.xlu0 %3282  ;;  %3854 = vmatmul.mubr.msk.f32.vlgmr.msra.gmra.mrb[2].mxu0 %vm553_vm3, %v156_v3  ;;  %v3287_v4 = vpop.permute.xlu1 %3286 }
 0x533   :  { %v3292_v22 = vsel %vm1568_vm1, %v3283_v45, %v3285_v1  ;;  %v3293_v50 = vsel %vm1568_vm1, %v3285_v1, %v3287_v4  ;;  %3371 = vmatprep.mubr.f32.mxu0 %v4887_v44 }
 0x534   :  { %3858 = vmatprep.subr.msk.mxu0 %vm1933_vm4, %v3293_v50 }
 0x535   :  { %3859 = vmatpush1.msk.msra.mxu0 %vm1933_vm4, %v3292_v22 }
 0x536   :  { %v3291_v48 = vpop.permute.xlu0 %3290  ;;  %3857 = vmatmul.mubr.msk.f32.vlgmr.msra.gmra.mrb[2].mxu1 %vm553_vm3, %v156_v3  ;;  %v3289_v8 = vpop.permute.xlu1 %3288 }
 0x537   :  { %v3294_v6 = vsel %vm1568_vm1, %v3287_v4, %v3289_v8  ;;  %v3295_v2 = vsel %vm1568_vm1, %v3289_v8, %v3291_v48  ;;  %3442 = vmatprep.mubr.f32.mxu1 %v4887_v44 }
 0x538   :  { %3861 = vmatprep.subr.msk.mxu1 %vm1933_vm4, %v3295_v2 }
 0x539   :  { %3862 = vmatpush1.msk.msra.mxu1 %vm1933_vm4, %v3294_v6 }
 0x53a   :  { %v3468_v38 = vpop.permute.xlu0 %3467  ;;  %3860 = vmatmul.mubr.msk.f32.vlgmr.msra.gmra.mrb[2].mxu0 %vm553_vm3, %v157_v12  ;;  %v3466_v53 = vpop.permute.xlu1 %3465 }
 0x53b   :  { %v3474_v63 = vsel %vm1771_vm2, %v3466_v53, %v3468_v38  ;;  %3552 = vmatprep.mubr.f32.mxu0 %v4887_v44 }
 0x53c   :  { %3864 = vmatprep.subr.msk.mxu0 %vm1933_vm4, %v3474_v63 }
 0x53e   :  { %3863 = vmatmul.mubr.msk.f32.vlgmr.msra.gmra.mrb[2].mxu1 %vm553_vm3, %v157_v12  ;;  %v3464_v9 = vpop.permute.xlu1 %3463  ;;  %v3470_v59 = vpop.permute.xlu0 %3469 }
 0x53f   :  { %v3473_v60 = vsel %vm1771_vm2, %v3464_v9, %v3466_v53  ;;  %3623 = vmatprep.mubr.f32.mxu1 %v4887_v44  ;;  %v3475_v14 = vsel %vm1771_vm2, %v3468_v38, %v3470_v59 }
 0x540   :  { %3865 = vmatpush1.msk.msra.mxu0 %vm1933_vm4, %v3473_v60 }
 0x542   :  { %3866 = vmatmul.mubr.msk.f32.vlgmr.msra.gmra.mrb[2].mxu0 %vm553_vm3, %v158_v43  ;;  %v3472_v13 = vpop.permute.xlu1 %3471 }
 0x543   :  { %v3476_v56 = vsel %vm1771_vm2, %v3470_v59, %v3472_v13 }
 0x544   :  { %3867 = vmatprep.subr.msk.mxu1 %vm1933_vm4, %v3476_v56 }
 0x545   :  { %3868 = vmatpush1.msk.msra.mxu1 %vm1933_vm4, %v3475_v14 }
 0x546   :  { %3869 = vmatmul.mubr.msk.f32.vlgmr.msra.gmra.mrb[2].mxu1 %vm553_vm3, %v158_v43 }
 0x615   :  { %v3554_v21 = vpop.f32.mrb[2].mxu0 }
 0x616   :  { %v3634_v11 = vsel %vm233_vm9, %v3554_v21, 0.0  ;;  %v3556_v44 = vpop.f32.mrb[3].mxu0 }
 0x617   :  { %v3635_v24 = vsel %vm233_vm9, %v3556_v44, 0.0 }
 0x618   :  { %v3636_v23 = vadd.f32 %v3635_v24, %v3634_v11 }
 0x619   :  { %v3625_v30 = vpop.f32.mrb[2].mxu1 }
 0x61a   :  { %v3637_v33 = vsel %vm233_vm9, %v3625_v30, 0.0  ;;  %v3627_v42 = vpop.f32.mrb[3].mxu1 }
 0x61b   :  { %v3638_v46 = vadd.f32 %v3637_v33, %v3636_v23  ;;  %v3639_v39 = vsel %vm233_vm9, %v3627_v42, 0.0 }
 0x61d   :  { %v3640_v58 = vadd.f32 %v3639_v39, %v3638_v46 }
 0x61f   :  { %3641 = vadd.xlane.f32.xlu0 %v3640_v58  ;;  %v4888_v58 = vrot.slane %v4101_v0, 4 }
 0x6ac   :  { %v3642_v52 = vpop.xlane.xlu0 %3641 }
 0x6ad   :  { %v3643_v20 = vmul.f32 0.001953125, %v3642_v52 }
 0x6af   :  { %v3644_v25 = vsub.f32 %v3554_v21, %v3643_v20  ;;  %v3645_v26 = vsub.f32 %v3556_v44, %v3643_v20  ;;  %v3646_v17 = vsub.f32 %v3625_v30, %v3643_v20  ;;  %v3647_v47 = vsub.f32 %v3627_v42, %v3643_v20  ;;  %v4889_v20 = vld [vmem:[#allocation5_spill] sm:$0xff] }
 0x6b1   :  { %v3648_v5 = vmul.f32 %v3644_v25, %v3644_v25  ;;  %v3649_v62 = vmul.f32 %v3645_v26, %v3645_v26  ;;  %v3650_v10 = vmul.f32 %v3646_v17, %v3646_v17  ;;  %v3651_v15 = vmul.f32 %v3647_v47, %v3647_v47 }
 0x6b3   :  { %v3652_v34 = vsel %vm233_vm9, %v3648_v5, 0.0  ;;  %v3653_v18 = vsel %vm233_vm9, %v3649_v62, 0.0  ;;  %v3655_v41 = vsel %vm233_vm9, %v3650_v10, 0.0  ;;  %v3657_v54 = vsel %vm233_vm9, %v3651_v15, 0.0  ;;  %v4026_v62 = vld [vmem:[%s4876_s0 + $0x8] sm:$0xff] }
 0x6b4   :  { %v3654_v31 = vadd.f32 %v3653_v18, %v3652_v34 }
 0x6b6   :  { %v3656_v37 = vadd.f32 %v3655_v41, %v3654_v31 }
 0x6b8   :  { %v3658_v7 = vadd.f32 %v3657_v54, %v3656_v37 }
 0x6ba   :  { %3659 = vadd.xlane.f32.xlu1 %v3658_v7 }
 0x6cb   :  { %3675 = vperm.xlu1 %4003, %v4552_v51  }
 0x747   :  { %v3660_v29 = vpop.xlane.xlu1 %3659 }
 0x748   :  { %v3661_v61 = vmul.f32 0.001953125, %v3660_v29 }
 0x74a   :  { %v3662_v55 = vadd.f32 1e-05, %v3661_v61 }
 0x74b   :  { %v3676_v36 = vpop.permute.xlu1 %3675 }
 0x74c   :  { %4015 = vrsqrt.f32 %v3662_v55 }
 0x756   :  { %v4016_v49 = vpop.eup %4015 }
 0x757   :  { %v3664_v28 = vmul.f32 %v4016_v49, %v4552_v51 }
 0x759   :  { %3667 = vperm.xlu0 %4002, %v3664_v28  }
 0x75d   :  { %4004 = vset.pattern.permute.xlu0 %v4071_v16 }
 0x7d8   :  { %v3668_v27 = vpop.permute.xlu0 %3667 }
 0x7d9   :  { %v3670_v40 = vmul.f32 %v3668_v27, %v3644_v25  ;;  %v3671_v1 = vmul.f32 %v3668_v27, %v3645_v26  ;;  %v3672_v35 = vmul.f32 %v3668_v27, %v3646_v17  ;;  %v3673_v32 = vmul.f32 %v3668_v27, %v3647_v47  ;;  %v4025_v17 = vld [vmem:[%s4876_s0] sm:$0xff] }
 0x7da   :  { %v4890_v25 = vrot.slane %v4889_v20, 4 }
 0x7db   :  { %v3678_v3 = vadd.f32 %v3676_v36, %v3670_v40  ;;  %v3679_v57 = vadd.f32 %v3676_v36, %v3671_v1  ;;  %v3680_v45 = vadd.f32 %v3676_v36, %v3672_v35  ;;  %v3681_v4 = vadd.f32 %v3676_v36, %v3673_v32 }
 0x7dd   :  { %v3682_v22 = vmin.f32 %v3678_v3, 0.0  ;;  %v3683_v50 = vmin.f32 %v3679_v57, 0.0  ;;  %v3684_v48 = vmin.f32 %v3680_v45, 0.0  ;;  %v3685_v8 = vmin.f32 %v3681_v4, 0.0 }
 0x7de   :  { %vm3702_vm0 = vcmp.gt.f32.partialorder %v3678_v3, 0.0  ;;  %vm3703_vm3 = vcmp.gt.f32.partialorder %v3679_v57, 0.0  ;;  %vm3704_vm8 = vcmp.gt.f32.partialorder %v3680_v45, 0.0  ;;  %vm3705_vm11 = vcmp.gt.f32.partialorder %v3681_v4, 0.0 }
 0x7df   :  { %v3686_v6 = vmul.f32 1.442695, %v3682_v22  ;;  %v3688_v2 = vmul.f32 1.442695, %v3683_v50  ;;  %v3690_v12 = vmul.f32 1.442695, %v3684_v48 }
 0x7e0   :  { %v3692_v51 = vmul.f32 1.442695, %v3685_v8 }
 0x7e1   :  { %4017 = vpow2.f32 %v3686_v6 }
 0x7e2   :  { %4019 = vpow2.f32 %v3688_v2 }
 0x7e3   :  { %4021 = vpow2.f32 %v3690_v12 }
 0x7e4   :  { %4023 = vpow2.f32 %v3692_v51 }
 0x7eb   :  { %v4018_v38 = vpop.eup %4017 }
 0x7ec   :  { %v4020_v53 = vpop.eup %4019  ;;  %v3870_v63 = vadd.f32 -1.0, %v4018_v38 }
 0x7ed   :  { %v4022_v9 = vpop.eup %4021  ;;  %v3871_v60 = vadd.f32 -1.0, %v4020_v53 }
 0x7ee   :  { %v4024_v43 = vpop.eup %4023  ;;  %v3872_v59 = vadd.f32 -1.0, %v4022_v9  ;;  %v3698_v13 = vmul.f32 1.6732632, %v3870_v63 }
 0x7ef   :  { %v3873_v56 = vadd.f32 -1.0, %v4024_v43  ;;  %v3699_v14 = vmul.f32 1.6732632, %v3871_v60 }
 0x7f0   :  { %v3700_v21 = vmul.f32 1.6732632, %v3872_v59  ;;  %v3706_v11 = vsel %vm3702_vm0, %v3678_v3, %v3698_v13 }
 0x7f1   :  { %v3701_v44 = vmul.f32 1.6732632, %v3873_v56  ;;  %v3707_v24 = vsel %vm3703_vm3, %v3679_v57, %v3699_v14  ;;  %v3710_v33 = vmul.f32 1.050701, %v3706_v11 }
 0x7f2   :  { %v3708_v23 = vsel %vm3704_vm8, %v3680_v45, %v3700_v21  ;;  %v3711_v46 = vmul.f32 1.050701, %v3707_v24 }
 0x7f3   :  { %v3709_v30 = vsel %vm3705_vm11, %v3681_v4, %v3701_v44  ;;  %v3712_v42 = vmul.f32 1.050701, %v3708_v23  ;;  %v3714_v47 = vadd.f32 %v4025_v17, %v3710_v33 }
 0x7f4   :  { %v3713_v39 = vmul.f32 1.050701, %v3709_v30  ;;  %v3715_v10 = vadd.f32 %v4026_v62, %v3711_v46 }
 0x7f5   :  { %v3716_v52 = vadd.f32 %v3712_v42, %v4888_v58 }
 0x7f6   :  { %v3717_v26 = vadd.f32 %v3713_v39, %v4890_v25 }
 0x7f7   :  { %v3720_v5 = vrot.slane %v3716_v52, 4 }
 0x7f8   :  { %v3721_v15 = vrot.slane %v3717_v26, 4 }
 0x7f9   :  { %v3724_v0 = vsel %vm233_vm9, %v3714_v47, %v3720_v5 }
 0x7fa   :  { %v3725_v34 = vsel %vm233_vm9, %v3715_v10, %v3721_v15  ;;  %3726 = vst [vmem:[#allocation2] sm:$0xff] %v3724_v0 }
 0x7fb   :  { %3727 = vst [vmem:[#allocation2 + $0x8] sm:$0xff] %v3725_v34 }
 0x7fc   :  { %4038 = shalt.err (!%p4035_p4)
}
 0x7fd   :  { %s4039_s0 = scalar_lea.hbm %s4880_s4, 256 }
 0x7fe   :  { %p4040_p5 = scmp.ne.s32.totalorder %s4880_s4, %s4039_s0  ;;  %p4043_p6 = scmp.lt.u32.totalorder %s4039_s0, %s4880_s4 }
 0x800   :  { %p4045_p7 = pnand %p4043_p6, %p4040_p5 }
 0x802   :  { %4048 = shalt.err (!%p4045_p7)
}
 0x803   :  { %3737 = dma.vmem_to_hbm [thread:$0]  %s3735_s20, 256, %s4880_s4, [#allocation3]  }
 0x804   :  { %4049 = dma.done.wait [#allocation3], 256  }
 0x805   :  { %4050 = vsyncadd [#allocation3], 4294967040 }
 0x806   :  { %3741 = vsyncpa [#allocation3], 1 }

</bundles_post_ra>
